<compile_context>
chip_gen: v6e
topology: v6e:2x2x1
jax: 0.10.0
libtpu: 0.0.40
codegen_flags: <defaults>
</compile_context>

<pallas_src>
import functools

import jax
import jax.numpy as jnp
from jax.experimental import pallas as pl
from jax.experimental.pallas import tpu as pltpu


def _round_up(x: int, m: int) -> int:
    return (x + m - 1) // m * m


def xor_mlp_kernel(x_ref, w1_ref, b1_ref, w2_ref, b2_ref, w3_ref, b3_ref,
                   o_ref, *, lane_dense_out: bool):
    """Fused MLP (3 matmuls + ReLUs + softmax) over one (TB, 65) batch tile."""

    def dense(a, w_ref, b_ref):
        w = w_ref[...]
        # Cast activations to the weight dtype (enables the bf16 MXU path);
        # accumulation stays f32 via preferred_element_type.
        return jnp.dot(a.astype(w.dtype), w,
                       preferred_element_type=jnp.float32) + b_ref[...]

    x = x_ref[...]                                        # (TB, 65) f32
    h1 = jnp.maximum(dense(x, w1_ref, b1_ref), 0.0)       # (TB, 128)
    h2 = jnp.maximum(dense(h1, w2_ref, b2_ref), 0.0)      # (TB, 64)
    logits = dense(h2, w3_ref, b3_ref)                    # (TB, 6)

    # Numerically stable softmax over dim=1 (feature axis); f32 math.
    m = jnp.max(logits, axis=-1, keepdims=True)
    e = jnp.exp(logits - m)
    denom = jnp.sum(e, axis=-1, keepdims=True)
    probs = e * pl.reciprocal(denom, approx=True)         # EUP slot, off the VALU

    if lane_dense_out:
        # Store transposed (6, TB): output last dim is a multiple of 128, so
        # stores are unmasked full-lane vst's (vs 6/128-lane masked stores).
        o_ref[...] = probs.T.astype(o_ref.dtype)
    else:
        o_ref[...] = probs.astype(o_ref.dtype)


def xor_model_forward(x, params, *, block_rows: int = 2048,
                      lane_dense_out: bool = True):
    """x: (B, 5, 13) or (B, 65). Returns (B, 6) softmax probabilities (f32)."""
    w1, b1, w2, b2, w3, b3 = params

    x2d = x.reshape(-1, 5 * 13).astype(jnp.float32)
    B = x2d.shape[0]

    # Batch tile: multiple of 128 (keeps the transposed output block lane-
    # aligned and the input block sublane-aligned), large enough to amortize
    # the fixed per-grid-step overhead, clamped for small batches.
    TB = min(_round_up(block_rows, 128), _round_up(B, 128))
    # Partial last block is masked by Pallas (no jnp.pad full-array copy).
    grid = (pl.cdiv(B, TB),)

    # Advisory cost hint for the XLA scheduler.
    n_params = 65 * 128 + 128 + 128 * 64 + 64 + 64 * 6 + 6
    cost = pl.CostEstimate(
        flops=2 * B * (65 * 128 + 128 * 64 + 64 * 6),
        transcendentals=7 * B,                       # exp + approx reciprocal
        bytes_accessed=4 * (B * 65 + B * 6 + n_params),
    )

    in_specs = [
        # Streamed over the batch: the only per-step HBM traffic.
        pl.BlockSpec((TB, 65), lambda i: (i, 0)),
        # Weights/biases: constant index_map -> stay VMEM-resident (~68 KB).
        pl.BlockSpec((65, 128), lambda i: (0, 0)),
        pl.BlockSpec((1, 128), lambda i: (0, 0)),
        pl.BlockSpec((128, 64), lambda i: (0, 0)),
        pl.BlockSpec((1, 64), lambda i: (0, 0)),
        pl.BlockSpec((64, 6), lambda i: (0, 0)),
        pl.BlockSpec((1, 6), lambda i: (0, 0)),
    ]

    if lane_dense_out:
        out_shape = jax.ShapeDtypeStruct((6, B), jnp.float32)
        out_specs = pl.BlockSpec((6, TB), lambda i: (0, i))
    else:
        out_shape = jax.ShapeDtypeStruct((B, 6), jnp.float32)
        out_specs = pl.BlockSpec((TB, 6), lambda i: (i, 0))

    kernel = functools.partial(xor_mlp_kernel, lane_dense_out=lane_dense_out)

    out = pl.pallas_call(
        kernel,
        out_shape=out_shape,
        grid=grid,
        in_specs=in_specs,
        out_specs=out_specs,
        compiler_params=pltpu.CompilerParams(
            # Batch steps are independent -> shard across TensorCores on v7x.
            dimension_semantics=("parallel",),
            # Tiles are small; 32 MiB is safe on v5e/v6e/v7x alike.
            vmem_limit_bytes=32 * 1024 * 1024,
        ),
        cost_estimate=cost,
    )(x2d, w1, b1, w2, b2, w3, b3)

    if lane_dense_out:
        out = out.T   # (B, 6); tiny wrapper-side transpose (B*6*4 bytes)
    return out


def init_params(key):
    """Deterministic synthetic parameters with the shapes nn.Linear implies."""
    k1, k2, k3, k4, k5, k6 = jax.random.split(key, 6)
    # stored as (in_features, out_features); biases as (1, out_features)
    w1 = jax.random.normal(k1, (65, 128), jnp.float32) * (1.0 / jnp.sqrt(65.0))
    b1 = jax.random.normal(k2, (1, 128), jnp.float32) * 0.01
    w2 = jax.random.normal(k3, (128, 64), jnp.float32) * (1.0 / jnp.sqrt(128.0))
    b2 = jax.random.normal(k4, (1, 64), jnp.float32) * 0.01
    w3 = jax.random.normal(k5, (64, 6), jnp.float32) * (1.0 / jnp.sqrt(64.0))
    b3 = jax.random.normal(k6, (1, 6), jnp.float32) * 0.01
    return (w1, b1, w2, b2, w3, b3)


def cast_params_bf16(params):
    """One-time weight cast (hoisted out of the forward path). Biases stay f32."""
    w1, b1, w2, b2, w3, b3 = params
    return (w1.astype(jnp.bfloat16), b1, w2.astype(jnp.bfloat16), b2,
            w3.astype(jnp.bfloat16), b3)


def _ref_forward(x, params):
    """Pure-JAX reference matching the PyTorch module (f32)."""
    w1, b1, w2, b2, w3, b3 = params
    h = x.reshape(-1, 5 * 13).astype(jnp.float32)
    h = jnp.maximum(h @ w1.astype(jnp.float32) + b1, 0.0)
    h = jnp.maximum(h @ w2.astype(jnp.float32) + b2, 0.0)
    logits = h @ w3.astype(jnp.float32) + b3
    return jax.nn.softmax(logits, axis=1)


def _forward_with_fallback(x, params, **kw):
    try:
        return jax.block_until_ready(xor_model_forward(x, params, **kw))
    except Exception:
        # TODO(synk): fallback for Mosaic builds that reject the 2-D (TB,6)->(6,TB)
        # transpose used for the lane-dense store; semantics are identical.
        return jax.block_until_ready(
            xor_model_forward(x, params, lane_dense_out=False, **kw))


if __name__ == "__main__":
    key = jax.random.PRNGKey(0)
    k_params, k_x, k_x2 = jax.random.split(key, 3)

    params = init_params(k_params)

    # Input consistent with forward(): view(-1, 5*13) => (B, 5, 13).
    # B=20 exercises the partial-block masking path (20 < TB=128), no jnp.pad.
    x = jax.random.normal(k_x, (20, 5, 13), jnp.float32)
    ref = _ref_forward(x, params)

    out = _forward_with_fallback(x, params)
    assert out.shape == (20, 6)
    # Tolerances allow the EUP approximate reciprocal in the softmax denominator.
    assert bool(jnp.allclose(jnp.sum(out, axis=1), 1.0, atol=1e-2))
    assert bool(jnp.allclose(out, ref, atol=1e-2))

    # Multi-step grid with a ragged tail (B % TB != 0): B=300, TB=128 -> grid=3.
    x2 = jax.random.normal(k_x2, (300, 5, 13), jnp.float32)
    out2 = _forward_with_fallback(x2, params, block_rows=128)
    assert out2.shape == (300, 6)
    assert bool(jnp.allclose(out2, _ref_forward(x2, params), atol=1e-2))

    # bf16 MXU path (weights cast once, f32 accumulation) -- looser tolerance.
    bf16_params = cast_params_bf16(params)
    out3 = _forward_with_fallback(x, bf16_params)
    assert out3.shape == (20, 6)
    assert bool(jnp.allclose(out3, ref, atol=5e-2))

    print("KERNEL_OK")
</pallas_src>

<mosaic_0001>
module attributes {stable_mosaic.version = 11 : i64} {
  func.func @xor_mlp_kernel(%arg0: i32, %arg1: memref<128x65xf32, #tpu.memory_space<vmem>>, %arg2: memref<65x128xf32, #tpu.memory_space<vmem>>, %arg3: memref<1x128xf32, #tpu.memory_space<vmem>>, %arg4: memref<128x64xf32, #tpu.memory_space<vmem>>, %arg5: memref<1x64xf32, #tpu.memory_space<vmem>>, %arg6: memref<64x6xf32, #tpu.memory_space<vmem>>, %arg7: memref<1x6xf32, #tpu.memory_space<vmem>>, %arg8: memref<6x128xf32, #tpu.memory_space<vmem>>) attributes {dimension_semantics = [#tpu.dimension_semantics<parallel>], iteration_bounds = array<i64: 1>, scalar_prefetch = 0 : i64, scratch_operands = 0 : i64, tpu.core_type = #tpu.core_type<tc>, window_params = [{transform_indices = @transform_0, window_bounds = array<i64: 128, 65>}, {pipeline_mode = #tpu.pipeline_mode<synchronous>, transform_indices = @transform_1, window_bounds = array<i64: 65, 128>}, {pipeline_mode = #tpu.pipeline_mode<synchronous>, transform_indices = @transform_2, window_bounds = array<i64: 1, 128>}, {pipeline_mode = #tpu.pipeline_mode<synchronous>, transform_indices = @transform_3, window_bounds = array<i64: 128, 64>}, {pipeline_mode = #tpu.pipeline_mode<synchronous>, transform_indices = @transform_4, window_bounds = array<i64: 1, 64>}, {pipeline_mode = #tpu.pipeline_mode<synchronous>, transform_indices = @transform_5, window_bounds = array<i64: 64, 6>}, {pipeline_mode = #tpu.pipeline_mode<synchronous>, transform_indices = @transform_6, window_bounds = array<i64: 1, 6>}, {transform_indices = @transform_7, window_bounds = array<i64: 6, 128>}]} {
    %c0 = arith.constant 0 : index
    %c0_0 = arith.constant 0 : index
    %0 = vector.load %arg1[%c0, %c0_0] : memref<128x65xf32, #tpu.memory_space<vmem>>, vector<128x65xf32>
    %c0_1 = arith.constant 0 : index
    %c0_2 = arith.constant 0 : index
    %1 = vector.load %arg2[%c0_1, %c0_2] : memref<65x128xf32, #tpu.memory_space<vmem>>, vector<65x128xf32>
    %cst = arith.constant dense<0.000000e+00> : vector<128x128xf32>
    %2 = tpu.matmul %0, %1, %cst {dimension_numbers = #tpu.dot_dimension_numbers<[1], [0], [0], [1], [0, 0, 1, 1], [], []>} : vector<128x65xf32>, vector<65x128xf32>, vector<128x128xf32> -> vector<128x128xf32>
    %c0_3 = arith.constant 0 : index
    %c0_4 = arith.constant 0 : index
    %3 = vector.load %arg3[%c0_3, %c0_4] : memref<1x128xf32, #tpu.memory_space<vmem>>, vector<1x128xf32>
    %4 = vector.broadcast %3 : vector<1x128xf32> to vector<128x128xf32>
    %5 = arith.addf %2, %4 : vector<128x128xf32>
    %cst_5 = arith.constant 0.000000e+00 : f32
    %6 = vector.broadcast %cst_5 : f32 to vector<128x128xf32>
    %7 = arith.maximumf %5, %6 : vector<128x128xf32>
    %c0_6 = arith.constant 0 : index
    %c0_7 = arith.constant 0 : index
    %8 = vector.load %arg4[%c0_6, %c0_7] : memref<128x64xf32, #tpu.memory_space<vmem>>, vector<128x64xf32>
    %cst_8 = arith.constant dense<0.000000e+00> : vector<128x64xf32>
    %9 = tpu.matmul %7, %8, %cst_8 {dimension_numbers = #tpu.dot_dimension_numbers<[1], [0], [0], [1], [0, 0, 1, 1], [], []>} : vector<128x128xf32>, vector<128x64xf32>, vector<128x64xf32> -> vector<128x64xf32>
    %c0_9 = arith.constant 0 : index
    %c0_10 = arith.constant 0 : index
    %10 = vector.load %arg5[%c0_9, %c0_10] : memref<1x64xf32, #tpu.memory_space<vmem>>, vector<1x64xf32>
    %11 = vector.broadcast %10 : vector<1x64xf32> to vector<128x64xf32>
    %12 = arith.addf %9, %11 : vector<128x64xf32>
    %cst_11 = arith.constant 0.000000e+00 : f32
    %13 = vector.broadcast %cst_11 : f32 to vector<128x64xf32>
    %14 = arith.maximumf %12, %13 : vector<128x64xf32>
    %c0_12 = arith.constant 0 : index
    %c0_13 = arith.constant 0 : index
    %15 = vector.load %arg6[%c0_12, %c0_13] : memref<64x6xf32, #tpu.memory_space<vmem>>, vector<64x6xf32>
    %cst_14 = arith.constant dense<0.000000e+00> : vector<128x6xf32>
    %16 = tpu.matmul %14, %15, %cst_14 {dimension_numbers = #tpu.dot_dimension_numbers<[1], [0], [0], [1], [0, 0, 1, 1], [], []>} : vector<128x64xf32>, vector<64x6xf32>, vector<128x6xf32> -> vector<128x6xf32>
    %c0_15 = arith.constant 0 : index
    %c0_16 = arith.constant 0 : index
    %17 = vector.load %arg7[%c0_15, %c0_16] : memref<1x6xf32, #tpu.memory_space<vmem>>, vector<1x6xf32>
    %18 = vector.broadcast %17 : vector<1x6xf32> to vector<128x6xf32>
    %19 = arith.addf %16, %18 : vector<128x6xf32>
    %cst_17 = arith.constant dense<0xFF800000> : vector<128xf32>
    %20 = vector.multi_reduction <maximumf>, %19, %cst_17 [1] : vector<128x6xf32> to vector<128xf32>
    %21 = vector.shape_cast %20 : vector<128xf32> to vector<128x1xf32>
    %22 = vector.broadcast %21 : vector<128x1xf32> to vector<128x6xf32>
    %23 = arith.subf %19, %22 : vector<128x6xf32>
    %24 = math.exp %23 : vector<128x6xf32>
    %cst_18 = arith.constant dense<0.000000e+00> : vector<128xf32>
    %25 = vector.multi_reduction <add>, %24, %cst_18 [1] : vector<128x6xf32> to vector<128xf32>
    %26 = vector.shape_cast %25 : vector<128xf32> to vector<128x1xf32>
    %27 = tpu.reciprocal %26 {approx = true} : vector<128x1xf32> -> vector<128x1xf32>
    %28 = vector.broadcast %27 : vector<128x1xf32> to vector<128x6xf32>
    %29 = arith.mulf %24, %28 : vector<128x6xf32>
    %30 = tpu.transpose %29, [1, 0] : vector<128x6xf32> -> vector<6x128xf32>
    %c0_19 = arith.constant 0 : index
    %c0_20 = arith.constant 0 : index
    %31 = vector.load %arg8[%c0_19, %c0_20] : memref<6x128xf32, #tpu.memory_space<vmem>>, vector<6x128xf32>
    tpu.vector_store %arg8[%c0_19, %c0_20], %30 {strides = array<i32>} : memref<6x128xf32, #tpu.memory_space<vmem>>, vector<6x128xf32>,
    return
  }
  func.func @transform_0(%arg0: i32) -> (i32, i32) {
    %c0_i32 = arith.constant 0 : i32
    %c0_i32_0 = arith.constant 0 : i32
    return %arg0, %c0_i32 : i32, i32
  }
  func.func @transform_1(%arg0: i32) -> (i32, i32) {
    %c0_i32 = arith.constant 0 : i32
    %c0_i32_0 = arith.constant 0 : i32
    %c0_i32_1 = arith.constant 0 : i32
    return %c0_i32, %c0_i32_0 : i32, i32
  }
  func.func @transform_2(%arg0: i32) -> (i32, i32) {
    %c0_i32 = arith.constant 0 : i32
    %c0_i32_0 = arith.constant 0 : i32
    %c0_i32_1 = arith.constant 0 : i32
    return %c0_i32, %c0_i32_0 : i32, i32
  }
  func.func @transform_3(%arg0: i32) -> (i32, i32) {
    %c0_i32 = arith.constant 0 : i32
    %c0_i32_0 = arith.constant 0 : i32
    %c0_i32_1 = arith.constant 0 : i32
    return %c0_i32, %c0_i32_0 : i32, i32
  }
  func.func @transform_4(%arg0: i32) -> (i32, i32) {
    %c0_i32 = arith.constant 0 : i32
    %c0_i32_0 = arith.constant 0 : i32
    %c0_i32_1 = arith.constant 0 : i32
    return %c0_i32, %c0_i32_0 : i32, i32
  }
  func.func @transform_5(%arg0: i32) -> (i32, i32) {
    %c0_i32 = arith.constant 0 : i32
    %c0_i32_0 = arith.constant 0 : i32
    %c0_i32_1 = arith.constant 0 : i32
    return %c0_i32, %c0_i32_0 : i32, i32
  }
  func.func @transform_6(%arg0: i32) -> (i32, i32) {
    %c0_i32 = arith.constant 0 : i32
    %c0_i32_0 = arith.constant 0 : i32
    %c0_i32_1 = arith.constant 0 : i32
    return %c0_i32, %c0_i32_0 : i32, i32
  }
  func.func @transform_7(%arg0: i32) -> (i32, i32) {
    %c0_i32 = arith.constant 0 : i32
    %c0_i32_0 = arith.constant 0 : i32
    return %c0_i32, %arg0 : i32, i32
  }
}

module attributes {stable_mosaic.version = 11 : i64} {
  func.func @xor_mlp_kernel(%arg0: i32, %arg1: memref<128x65xf32, #tpu.memory_space<vmem>>, %arg2: memref<65x128xf32, #tpu.memory_space<vmem>>, %arg3: memref<1x128xf32, #tpu.memory_space<vmem>>, %arg4: memref<128x64xf32, #tpu.memory_space<vmem>>, %arg5: memref<1x64xf32, #tpu.memory_space<vmem>>, %arg6: memref<64x6xf32, #tpu.memory_space<vmem>>, %arg7: memref<1x6xf32, #tpu.memory_space<vmem>>, %arg8: memref<128x6xf32, #tpu.memory_space<vmem>>) attributes {dimension_semantics = [#tpu.dimension_semantics<parallel>], iteration_bounds = array<i64: 1>, scalar_prefetch = 0 : i64, scratch_operands = 0 : i64, tpu.core_type = #tpu.core_type<tc>, window_params = [{transform_indices = @transform_0, window_bounds = array<i64: 128, 65>}, {pipeline_mode = #tpu.pipeline_mode<synchronous>, transform_indices = @transform_1, window_bounds = array<i64: 65, 128>}, {pipeline_mode = #tpu.pipeline_mode<synchronous>, transform_indices = @transform_2, window_bounds = array<i64: 1, 128>}, {pipeline_mode = #tpu.pipeline_mode<synchronous>, transform_indices = @transform_3, window_bounds = array<i64: 128, 64>}, {pipeline_mode = #tpu.pipeline_mode<synchronous>, transform_indices = @transform_4, window_bounds = array<i64: 1, 64>}, {pipeline_mode = #tpu.pipeline_mode<synchronous>, transform_indices = @transform_5, window_bounds = array<i64: 64, 6>}, {pipeline_mode = #tpu.pipeline_mode<synchronous>, transform_indices = @transform_6, window_bounds = array<i64: 1, 6>}, {transform_indices = @transform_7, window_bounds = array<i64: 128, 6>}]} {
    %c0 = arith.constant 0 : index
    %c0_0 = arith.constant 0 : index
    %0 = vector.load %arg1[%c0, %c0_0] : memref<128x65xf32, #tpu.memory_space<vmem>>, vector<128x65xf32>
    %c0_1 = arith.constant 0 : index
    %c0_2 = arith.constant 0 : index
    %1 = vector.load %arg2[%c0_1, %c0_2] : memref<65x128xf32, #tpu.memory_space<vmem>>, vector<65x128xf32>
    %cst = arith.constant dense<0.000000e+00> : vector<128x128xf32>
    %2 = tpu.matmul %0, %1, %cst {dimension_numbers = #tpu.dot_dimension_numbers<[1], [0], [0], [1], [0, 0, 1, 1], [], []>} : vector<128x65xf32>, vector<65x128xf32>, vector<128x128xf32> -> vector<128x128xf32>
    %c0_3 = arith.constant 0 : index
    %c0_4 = arith.constant 0 : index
    %3 = vector.load %arg3[%c0_3, %c0_4] : memref<1x128xf32, #tpu.memory_space<vmem>>, vector<1x128xf32>
    %4 = vector.broadcast %3 : vector<1x128xf32> to vector<128x128xf32>
    %5 = arith.addf %2, %4 : vector<128x128xf32>
    %cst_5 = arith.constant 0.000000e+00 : f32
    %6 = vector.broadcast %cst_5 : f32 to vector<128x128xf32>
    %7 = arith.maximumf %5, %6 : vector<128x128xf32>
    %c0_6 = arith.constant 0 : index
    %c0_7 = arith.constant 0 : index
    %8 = vector.load %arg4[%c0_6, %c0_7] : memref<128x64xf32, #tpu.memory_space<vmem>>, vector<128x64xf32>
    %cst_8 = arith.constant dense<0.000000e+00> : vector<128x64xf32>
    %9 = tpu.matmul %7, %8, %cst_8 {dimension_numbers = #tpu.dot_dimension_numbers<[1], [0], [0], [1], [0, 0, 1, 1], [], []>} : vector<128x128xf32>, vector<128x64xf32>, vector<128x64xf32> -> vector<128x64xf32>
    %c0_9 = arith.constant 0 : index
    %c0_10 = arith.constant 0 : index
    %10 = vector.load %arg5[%c0_9, %c0_10] : memref<1x64xf32, #tpu.memory_space<vmem>>, vector<1x64xf32>
    %11 = vector.broadcast %10 : vector<1x64xf32> to vector<128x64xf32>
    %12 = arith.addf %9, %11 : vector<128x64xf32>
    %cst_11 = arith.constant 0.000000e+00 : f32
    %13 = vector.broadcast %cst_11 : f32 to vector<128x64xf32>
    %14 = arith.maximumf %12, %13 : vector<128x64xf32>
    %c0_12 = arith.constant 0 : index
    %c0_13 = arith.constant 0 : index
    %15 = vector.load %arg6[%c0_12, %c0_13] : memref<64x6xf32, #tpu.memory_space<vmem>>, vector<64x6xf32>
    %cst_14 = arith.constant dense<0.000000e+00> : vector<128x6xf32>
    %16 = tpu.matmul %14, %15, %cst_14 {dimension_numbers = #tpu.dot_dimension_numbers<[1], [0], [0], [1], [0, 0, 1, 1], [], []>} : vector<128x64xf32>, vector<64x6xf32>, vector<128x6xf32> -> vector<128x6xf32>
    %c0_15 = arith.constant 0 : index
    %c0_16 = arith.constant 0 : index
    %17 = vector.load %arg7[%c0_15, %c0_16] : memref<1x6xf32, #tpu.memory_space<vmem>>, vector<1x6xf32>
    %18 = vector.broadcast %17 : vector<1x6xf32> to vector<128x6xf32>
    %19 = arith.addf %16, %18 : vector<128x6xf32>
    %cst_17 = arith.constant dense<0xFF800000> : vector<128xf32>
    %20 = vector.multi_reduction <maximumf>, %19, %cst_17 [1] : vector<128x6xf32> to vector<128xf32>
    %21 = vector.shape_cast %20 : vector<128xf32> to vector<128x1xf32>
    %22 = vector.broadcast %21 : vector<128x1xf32> to vector<128x6xf32>
    %23 = arith.subf %19, %22 : vector<128x6xf32>
    %24 = math.exp %23 : vector<128x6xf32>
    %cst_18 = arith.constant dense<0.000000e+00> : vector<128xf32>
    %25 = vector.multi_reduction <add>, %24, %cst_18 [1] : vector<128x6xf32> to vector<128xf32>
    %26 = vector.shape_cast %25 : vector<128xf32> to vector<128x1xf32>
    %27 = tpu.reciprocal %26 {approx = true} : vector<128x1xf32> -> vector<128x1xf32>
    %28 = vector.broadcast %27 : vector<128x1xf32> to vector<128x6xf32>
    %29 = arith.mulf %24, %28 : vector<128x6xf32>
    %c0_19 = arith.constant 0 : index
    %c0_20 = arith.constant 0 : index
    %30 = vector.load %arg8[%c0_19, %c0_20] : memref<128x6xf32, #tpu.memory_space<vmem>>, vector<128x6xf32>
    tpu.vector_store %arg8[%c0_19, %c0_20], %29 {strides = array<i32>} : memref<128x6xf32, #tpu.memory_space<vmem>>, vector<128x6xf32>,
    return
  }
  func.func @transform_0(%arg0: i32) -> (i32, i32) {
    %c0_i32 = arith.constant 0 : i32
    %c0_i32_0 = arith.constant 0 : i32
    return %arg0, %c0_i32 : i32, i32
  }
  func.func @transform_1(%arg0: i32) -> (i32, i32) {
    %c0_i32 = arith.constant 0 : i32
    %c0_i32_0 = arith.constant 0 : i32
    %c0_i32_1 = arith.constant 0 : i32
    return %c0_i32, %c0_i32_0 : i32, i32
  }
  func.func @transform_2(%arg0: i32) -> (i32, i32) {
    %c0_i32 = arith.constant 0 : i32
    %c0_i32_0 = arith.constant 0 : i32
    %c0_i32_1 = arith.constant 0 : i32
    return %c0_i32, %c0_i32_0 : i32, i32
  }
  func.func @transform_3(%arg0: i32) -> (i32, i32) {
    %c0_i32 = arith.constant 0 : i32
    %c0_i32_0 = arith.constant 0 : i32
    %c0_i32_1 = arith.constant 0 : i32
    return %c0_i32, %c0_i32_0 : i32, i32
  }
  func.func @transform_4(%arg0: i32) -> (i32, i32) {
    %c0_i32 = arith.constant 0 : i32
    %c0_i32_0 = arith.constant 0 : i32
    %c0_i32_1 = arith.constant 0 : i32
    return %c0_i32, %c0_i32_0 : i32, i32
  }
  func.func @transform_5(%arg0: i32) -> (i32, i32) {
    %c0_i32 = arith.constant 0 : i32
    %c0_i32_0 = arith.constant 0 : i32
    %c0_i32_1 = arith.constant 0 : i32
    return %c0_i32, %c0_i32_0 : i32, i32
  }
  func.func @transform_6(%arg0: i32) -> (i32, i32) {
    %c0_i32 = arith.constant 0 : i32
    %c0_i32_0 = arith.constant 0 : i32
    %c0_i32_1 = arith.constant 0 : i32
    return %c0_i32, %c0_i32_0 : i32, i32
  }
  func.func @transform_7(%arg0: i32) -> (i32, i32) {
    %c0_i32 = arith.constant 0 : i32
    %c0_i32_0 = arith.constant 0 : i32
    return %arg0, %c0_i32 : i32, i32
  }
}

</mosaic_0001>

<bundles_post_ra>
// kernel: tpu_custom_call.1
= control target key start
LH: loop header
LB: loop body
LE: loop exit
PB: predicated region body
PF: predicated region fallthrough
CT: control target
= control target key end

     0   :  { %vm108_vm0 = vcmask 1040384   ;;  %vm59_vm1 = vcmask 531456   ;;  %s1658_s0 = inlined_call_operand.vmem [shape: f32[20,65], index: 0, kind: input, shape index: {}]   ;;  %s1659_s1 = inlined_call_operand.vmem [shape: f32[65,128], index: 1, kind: input, shape index: {}]   ;;  %s1660_s2 = inlined_call_operand.vmem [shape: f32[1,128], index: 2, kind: input, shape index: {}]   ;;  %s1661_s3 = inlined_call_operand.vmem [shape: f32[128,64], index: 3, kind: input, shape index: {}]   ;;  %s1662_s4 = inlined_call_operand.vmem [shape: f32[1,64], index: 4, kind: input, shape index: {}]   ;;  %s1663_s5 = inlined_call_operand.vmem [shape: f32[64,6], index: 5, kind: input, shape index: {}]   ;;  %s1664_s6 = inlined_call_operand.vmem [shape: f32[1,6], index: 6, kind: input, shape index: {}]   ;;  %s1665_s7 = inlined_call_operand.hbm [shape: f32[6,20], index: 7, kind: output, shape index: {}]  }
   0x1   :  { %v51_v0 = vld [vmem:[%s1659_s1 + $0x40] sm:$0x1]  ;;  %v50_v1 = vld [vmem:[%s1659_s1 + $0x38] sm:$0xff]  ;;  %v49_v2 = vld [vmem:[%s1659_s1 + $0x30] sm:$0xff] }
   0x2   :  { %1007 = vmatprep.subr.msk.mxu0 %vm108_vm0, %v51_v0  ;;  %v27_v3 = vld [vmem:[%s1658_s0] sm:$0xff]  ;;  %v48_v4 = vld [vmem:[%s1659_s1 + $0x28] sm:$0xff]  ;;  %v46_v6 = vld [vmem:[%s1659_s1 + $0x18] sm:$0xff] }
   0x3   :  { %1008 = vmatpush3.msk.msra.mxu0 %vm108_vm0, %v51_v0  ;;  %1025 = vmatprep.mubr.msk.f32.mxu0 %vm59_vm1, %v27_v3  ;;  %v47_v5 = vld [vmem:[%s1659_s1 + $0x20] sm:$0xff]  ;;  %v288_v7 = vld [vmem:[%s1661_s3 + $0x78] sm:$0xff]  ;;  %v287_v8 = vld [vmem:[%s1661_s3 + $0x70] sm:$0xff] }
   0x4   :  { %1009 = vmatprep.subr.mxu0 %v50_v1  ;;  %1049 = vmatprep.subr.mxu1 %v288_v7  ;;  %v45_v9 = vld [vmem:[%s1659_s1 + $0x10] sm:$0xff]  ;;  %v286_v10 = vld [vmem:[%s1661_s3 + $0x68] sm:$0xff]  ;;  %v285_v12 = vld [vmem:[%s1661_s3 + $0x60] sm:$0xff] }
   0x5   :  { %1010 = vmatpush3.msra.mxu0 %v50_v1  ;;  %1050 = vmatpush3.msra.mxu1 %v288_v7  ;;  %v44_v11 = vld [vmem:[%s1659_s1 + $0x8] sm:$0xff] }
   0x6   :  { %1011 = vmatprep.subr.mxu0 %v49_v2  ;;  %1051 = vmatprep.subr.mxu1 %v287_v8 }
   0x7   :  { %1012 = vmatpush3.msra.mxu0 %v49_v2  ;;  %1052 = vmatpush3.msra.mxu1 %v287_v8 }
   0x8   :  { %1013 = vmatprep.subr.mxu0 %v48_v4 }
   0x9   :  { %1014 = vmatpush3.msra.mxu0 %v48_v4 }
   0xa   :  { %1015 = vmatprep.subr.mxu0 %v47_v5 }
   0xb   :  { %1016 = vmatpush3.msra.mxu0 %v47_v5 }
   0xc   :  { %1017 = vmatprep.subr.mxu0 %v46_v6 }
   0xd   :  { %1018 = vmatpush3.msra.mxu0 %v46_v6 }
   0xe   :  { %12 = vsyncpa [#allocation3], 0  ;;  %1019 = vmatprep.subr.mxu0 %v45_v9  ;;  %1053 = vmatprep.subr.mxu1 %v286_v10  ;;  %v43_v13 = vld [vmem:[%s1659_s1] sm:$0xff]  ;;  %v284_v14 = vld [vmem:[%s1661_s3 + $0x58] sm:$0xff]  ;;  %vm472_vm2 = vcmask 523264   ;;  %vm666_vm3 = vcmask 48128  }
   0xf   :  { %1020 = vmatpush3.msra.mxu0 %v45_v9  ;;  %1054 = vmatpush3.msra.mxu1 %v286_v10  ;;  %v28_v15 = vld [vmem:[%s1658_s0 + $0x8] sm:$0xff]  ;;  %v283_v16 = vld [vmem:[%s1661_s3 + $0x50] sm:$0xff]  ;;  %v30_v19 = vld [vmem:[%s1658_s0 + $0x18] sm:$0xff] }
  0x10   :  { %1021 = vmatprep.subr.mxu0 %v44_v11  ;;  %1055 = vmatprep.subr.mxu1 %v285_v12  ;;  %v29_v17 = vld [vmem:[%s1658_s0 + $0x10] sm:$0xff]  ;;  %v282_v18 = vld [vmem:[%s1661_s3 + $0x48] sm:$0xff]  ;;  %v281_v20 = vld [vmem:[%s1661_s3 + $0x40] sm:$0xff] }
  0x11   :  { %1022 = vmatpush3.msra.mxu0 %v44_v11  ;;  %1056 = vmatpush3.msra.mxu1 %v285_v12  ;;  %v31_v21 = vld [vmem:[%s1658_s0 + $0x20] sm:$0xff]  ;;  %v280_v22 = vld [vmem:[%s1661_s3 + $0x38] sm:$0xff]  ;;  %v32_v23 = vld [vmem:[%s1658_s0 + $0x28] sm:$0xff] }
  0x12   :  { %1023 = vmatprep.subr.mxu0 %v43_v13  ;;  %1057 = vmatprep.subr.mxu1 %v284_v14  ;;  %v279_v24 = vld [vmem:[%s1661_s3 + $0x30] sm:$0xff]  ;;  %v278_v26 = vld [vmem:[%s1661_s3 + $0x28] sm:$0xff]  ;;  %v34_v27 = vld [vmem:[%s1658_s0 + $0x38] sm:$0xff] }
  0x13   :  { %1024 = vmatpush3.msra.mxu0 %v43_v13  ;;  %1058 = vmatpush3.msra.mxu1 %v284_v14  ;;  %v33_v25 = vld [vmem:[%s1658_s0 + $0x30] sm:$0xff]  ;;  %v277_v28 = vld [vmem:[%s1661_s3 + $0x20] sm:$0xff]  ;;  %v36_v30 = vld [vmem:[%s1658_s0 + $0x48] sm:$0xff] }
  0x14   :  { %1026 = vmatmul.mubr.msk.f32.vlgmr.msra.gmra.mxu0 %vm59_vm1, %v28_v15  ;;  %1059 = vmatprep.subr.mxu1 %v283_v16  ;;  %v35_v29 = vld [vmem:[%s1658_s0 + $0x40] sm:$0xff]  ;;  %v37_v31 = vld [vmem:[%s1658_s0 + $0x50] sm:$0xff]  ;;  %v38_v32 = vld [vmem:[%s1658_s0 + $0x58] sm:$0xff] }
  0x15   :  { %1028 = vmatprep.mubr.msk.f32.mxu0 %vm59_vm1, %v29_v17  ;;  %1060 = vmatpush3.msra.mxu1 %v283_v16  ;;  %v39_v33 = vld [vmem:[%s1658_s0 + $0x60] sm:$0xff]  ;;  %v40_v34 = vld [vmem:[%s1658_s0 + $0x68] sm:$0xff]  ;;  %v41_v35 = vld [vmem:[%s1658_s0 + $0x70] sm:$0xff] }
  0x16   :  { %1061 = vmatprep.subr.mxu1 %v282_v18  ;;  %v42_v36 = vld [vmem:[%s1658_s0 + $0x78] sm:$0xff]  ;;  %v275_v38 = vld [vmem:[%s1661_s3 + $0x10] sm:$0xff]  ;;  %v274_v39 = vld [vmem:[%s1661_s3 + $0x8] sm:$0xff] }
  0x17   :  { %1062 = vmatpush3.msra.mxu1 %v282_v18  ;;  %v276_v37 = vld [vmem:[%s1661_s3 + $0x18] sm:$0xff]  ;;  %v273_v40 = vld [vmem:[%s1661_s3] sm:$0xff]  ;;  %v463_v42 = vld [vmem:[%s1663_s5 + $0x30] sm:$0xff] }
  0x18   :  { %1029 = vmatmul.mubr.msk.f32.gmra.mxu0 %vm59_vm1, %v30_v19  ;;  %1063 = vmatprep.subr.mxu1 %v281_v20  ;;  %v464_v41 = vld [vmem:[%s1663_s5 + $0x38] sm:$0xff]  ;;  %v462_v43 = vld [vmem:[%s1663_s5 + $0x28] sm:$0xff]  ;;  %v461_v44 = vld [vmem:[%s1663_s5 + $0x20] sm:$0xff] }
  0x19   :  { %1031 = vmatprep.mubr.msk.f32.mxu0 %vm59_vm1, %v31_v21  ;;  %1064 = vmatpush3.msra.mxu1 %v281_v20  ;;  %v460_v45 = vld [vmem:[%s1663_s5 + $0x18] sm:$0xff]  ;;  %v459_v46 = vld [vmem:[%s1663_s5 + $0x10] sm:$0xff]  ;;  %v458_v47 = vld [vmem:[%s1663_s5 + $0x8] sm:$0xff] }
  0x1a   :  { %1065 = vmatprep.subr.mxu1 %v280_v22  ;;  %1105 = vmatprep.subr.mxu0 %v464_v41  ;;  %v1452_v48 = vld [vmem:[%s1660_s2] ss:$0 sm:$0xff] }
  0x1b   :  { %1066 = vmatpush3.msra.mxu1 %v280_v22  ;;  %1106 = vmatpush3.msra.mxu0 %v464_v41 }
  0x1c   :  { %1032 = vmatmul.mubr.msk.f32.gmra.mxu0 %vm59_vm1, %v32_v23  ;;  %1067 = vmatprep.subr.mxu1 %v279_v24 }
  0x1d   :  { %1034 = vmatprep.mubr.msk.f32.mxu0 %vm59_vm1, %v33_v25  ;;  %1068 = vmatpush3.msra.mxu1 %v279_v24 }
  0x1e   :  { %1069 = vmatprep.subr.mxu1 %v278_v26  ;;  %1107 = vmatprep.subr.mxu0 %v463_v42 }
  0x1f   :  { %1070 = vmatpush3.msra.mxu1 %v278_v26  ;;  %1108 = vmatpush3.msra.mxu0 %v463_v42 }
  0x20   :  { %1035 = vmatmul.mubr.msk.f32.gmra.mxu0 %vm59_vm1, %v34_v27  ;;  %1071 = vmatprep.subr.mxu1 %v277_v28 }
  0x21   :  { %1037 = vmatprep.mubr.msk.f32.mxu0 %vm59_vm1, %v35_v29  ;;  %1072 = vmatpush3.msra.mxu1 %v277_v28 }
  0x22   :  { %1073 = vmatprep.subr.mxu1 %v276_v37  ;;  %1109 = vmatprep.subr.mxu0 %v462_v43 }
  0x23   :  { %1074 = vmatpush3.msra.mxu1 %v276_v37  ;;  %1110 = vmatpush3.msra.mxu0 %v462_v43 }
  0x24   :  { %1038 = vmatmul.mubr.msk.f32.gmra.mxu0 %vm59_vm1, %v36_v30  ;;  %1075 = vmatprep.subr.mxu1 %v275_v38 }
  0x25   :  { %1040 = vmatprep.mubr.msk.f32.mxu0 %vm59_vm1, %v37_v31  ;;  %1076 = vmatpush3.msra.mxu1 %v275_v38 }
  0x26   :  { %1077 = vmatprep.subr.mxu1 %v274_v39  ;;  %1111 = vmatprep.subr.mxu0 %v461_v44 }
  0x27   :  { %1078 = vmatpush3.msra.mxu1 %v274_v39  ;;  %1112 = vmatpush3.msra.mxu0 %v461_v44 }
  0x28   :  { %1041 = vmatmul.mubr.msk.f32.gmra.mxu0 %vm59_vm1, %v38_v32  ;;  %1079 = vmatprep.subr.mxu1 %v273_v40 }
  0x29   :  { %1043 = vmatprep.mubr.msk.f32.mxu0 %vm59_vm1, %v39_v33  ;;  %1080 = vmatpush3.msra.mxu1 %v273_v40  ;;  %v457_v33 = vld [vmem:[%s1663_s5] sm:$0xff] }
  0x2a   :  { %1145 = vmatprep.subr.mxu1 %v464_v41  ;;  %1113 = vmatprep.subr.mxu0 %v460_v45 }
  0x2b   :  { %1114 = vmatpush3.msra.mxu0 %v460_v45 }
  0x2c   :  { %1044 = vmatmul.mubr.msk.f32.gmra.mxu0 %vm59_vm1, %v40_v34  ;;  %1115 = vmatprep.subr.mxu0 %v459_v46  ;;  %v908_v34 = vld [vmem:[%s1662_s4] ss:$0 sm:$0xff] }
  0x2d   :  { %1046 = vmatprep.mubr.msk.f32.mxu0 %vm59_vm1, %v41_v35  ;;  %1116 = vmatpush3.msra.mxu0 %v459_v46 }
  0x2e   :  { %1117 = vmatprep.subr.mxu0 %v458_v47 }
  0x2f   :  { %1118 = vmatpush3.msra.mxu0 %v458_v47 }
  0x30   :  { %1047 = vmatmul.mubr.msk.f32.gmra.mxu0 %vm59_vm1, %v42_v36  ;;  %1119 = vmatprep.subr.mxu0 %v457_v33 }
  0x31   :  { %1120 = vmatpush3.msra.mxu0 %v457_v33 }
  0xd4   :  { %v1027_v49 = vpop.f32.mrf.mxu0 }
  0xd5   :  { %v184_v50 = vadd.f32 %v1027_v49, %v1452_v48 }
  0xd6   :  { %v178_v51 = vpop.f32.mrf.mxu0 }
  0xd7   :  { %v179_v52 = vadd.f32 %v1452_v48, %v178_v51  ;;  %v258_v56 = vmax.f32 %v184_v50, 0.0 }
  0xd8   :  { %v1030_v53 = vpop.f32.mrf.mxu0 }
  0xd9   :  { %v194_v54 = vadd.f32 %v1030_v53, %v1452_v48  ;;  %v257_v55 = vmax.f32 %v179_v52, 0.0 }
  0xda   :  { %v188_v57 = vpop.f32.mrf.mxu0 }
  0xdb   :  { %v189_v58 = vadd.f32 %v1452_v48, %v188_v57  ;;  %1081 = vmatprep.mubr.f32.mxu1 %v257_v55  ;;  %v260_v59 = vmax.f32 %v194_v54, 0.0 }
  0xdc   :  { %v1033_v60 = vpop.f32.mrf.mxu0  ;;  %1082 = vmatmul.mubr.f32.vlgmr.msra.gmra.mxu1 %v258_v56 }
  0xdd   :  { %v259_v61 = vmax.f32 %v189_v58, 0.0  ;;  %v204_v62 = vadd.f32 %v1033_v60, %v1452_v48  ;;  %1153 = vmatpush3.msra.mxu1 %v464_v41 }
  0xde   :  { %v198_v63 = vpop.f32.mrf.mxu0  ;;  %1146 = vmatprep.subr.mxu1 %v463_v42 }
  0xdf   :  { %v199_v0 = vadd.f32 %v1452_v48, %v198_v63  ;;  %1084 = vmatprep.mubr.f32.mxu1 %v259_v61  ;;  %1154 = vmatpush3.msra.mxu1 %v463_v42  ;;  %v262_v1 = vmax.f32 %v204_v62, 0.0 }
  0xe0   :  { %v1036_v2 = vpop.f32.mrf.mxu0  ;;  %1085 = vmatmul.mubr.f32.gmra.mxu1 %v260_v59  ;;  %1147 = vmatprep.subr.mxu1 %v462_v43 }
  0xe1   :  { %v261_v3 = vmax.f32 %v199_v0, 0.0  ;;  %v214_v4 = vadd.f32 %v1036_v2, %v1452_v48  ;;  %1155 = vmatpush3.msra.mxu1 %v462_v43 }
  0xe2   :  { %v208_v5 = vpop.f32.mrf.mxu0  ;;  %1148 = vmatprep.subr.mxu1 %v461_v44 }
  0xe3   :  { %v209_v6 = vadd.f32 %v1452_v48, %v208_v5  ;;  %1087 = vmatprep.mubr.f32.mxu1 %v261_v3  ;;  %1156 = vmatpush3.msra.mxu1 %v461_v44  ;;  %v264_v7 = vmax.f32 %v214_v4, 0.0 }
  0xe4   :  { %v1039_v8 = vpop.f32.mrf.mxu0  ;;  %1088 = vmatmul.mubr.f32.gmra.mxu1 %v262_v1  ;;  %1149 = vmatprep.subr.mxu1 %v460_v45 }
  0xe5   :  { %v263_v9 = vmax.f32 %v209_v6, 0.0  ;;  %v224_v10 = vadd.f32 %v1039_v8, %v1452_v48  ;;  %1157 = vmatpush3.msra.mxu1 %v460_v45 }
  0xe6   :  { %v218_v11 = vpop.f32.mrf.mxu0  ;;  %1150 = vmatprep.subr.mxu1 %v459_v46 }
  0xe7   :  { %v219_v12 = vadd.f32 %v1452_v48, %v218_v11  ;;  %1090 = vmatprep.mubr.f32.mxu1 %v263_v9  ;;  %1158 = vmatpush3.msra.mxu1 %v459_v46  ;;  %v266_v13 = vmax.f32 %v224_v10, 0.0 }
  0xe8   :  { %v1042_v14 = vpop.f32.mrf.mxu0  ;;  %1091 = vmatmul.mubr.f32.gmra.mxu1 %v264_v7  ;;  %1151 = vmatprep.subr.mxu1 %v458_v47 }
  0xe9   :  { %v265_v15 = vmax.f32 %v219_v12, 0.0  ;;  %v234_v16 = vadd.f32 %v1042_v14, %v1452_v48  ;;  %1159 = vmatpush3.msra.mxu1 %v458_v47 }
  0xea   :  { %v228_v17 = vpop.f32.mrf.mxu0  ;;  %1152 = vmatprep.subr.mxu1 %v457_v33 }
  0xeb   :  { %v229_v18 = vadd.f32 %v1452_v48, %v228_v17  ;;  %1093 = vmatprep.mubr.f32.mxu1 %v265_v15  ;;  %v268_v19 = vmax.f32 %v234_v16, 0.0  ;;  %1160 = vmatpush3.msra.mxu1 %v457_v33 }
  0xec   :  { %v1045_v20 = vpop.f32.mrf.mxu0  ;;  %1094 = vmatmul.mubr.f32.gmra.mxu1 %v266_v13 }
  0xed   :  { %v267_v21 = vmax.f32 %v229_v18, 0.0  ;;  %v244_v22 = vadd.f32 %v1045_v20, %v1452_v48  ;;  %v909_v20 = vld [vmem:[%s1664_s6] ss:$0 sm:$0xff]  ;;  %s1248_s6 = smov [#allocation2]  }
  0xee   :  { %v238_v23 = vpop.f32.mrf.mxu0  ;;  %s882_s28 = sshll.u32 %s1248_s6, 4  ;;  %s883_s28 = int_to_ptr.vmem [resolvable:$true] %s882_s28 }
  0xef   :  { %v239_v24 = vadd.f32 %v1452_v48, %v238_v23  ;;  %1096 = vmatprep.mubr.f32.mxu1 %v267_v21  ;;  %v270_v25 = vmax.f32 %v244_v22, 0.0  ;;  %s1226_s29 = scalar_lea.vmem %s883_s28, 128  ;;  %p1231_p1 = scmp.lt.s32.totalorder %s883_s28, %s883_s28 }
  0xf0   :  { %v1048_v26 = vpop.f32.mrf.mxu0  ;;  %1097 = vmatmul.mubr.f32.gmra.mxu1 %v268_v19  ;;  %p1227_p0 = scmp.ne.s32.totalorder %s883_s28, %s1226_s29  ;;  %p1232_p2 = scmp.lt.s32.totalorder %s1226_s29, %s1226_s29 }
  0xf1   :  { %v269_v27 = vmax.f32 %v239_v24, 0.0  ;;  %v254_v28 = vadd.f32 %v1048_v26, %v1452_v48 }
  0xf2   :  { %v248_v29 = vpop.f32.mrf.mxu0  ;;  %p1233_p3 = por %p1232_p2, %p1231_p1 }
  0xf3   :  { %v249_v30 = vadd.f32 %v1452_v48, %v248_v29  ;;  %1099 = vmatprep.mubr.f32.mxu1 %v269_v27  ;;  %v272_v31 = vmax.f32 %v254_v28, 0.0 }
  0xf4   :  { %1100 = vmatmul.mubr.f32.gmra.mxu1 %v270_v25  ;;  %p1234_p4 = pnand %p1233_p3, %p1227_p0 }
  0xf5   :  { %v271_v32 = vmax.f32 %v249_v30, 0.0 }
  0xf7   :  { %1102 = vmatprep.mubr.f32.mxu1 %v271_v32 }
  0xf8   :  { %1103 = vmatmul.mubr.f32.gmra.mxu1 %v272_v31 }
 0x19c   :  { %v1083_v35 = vpop.f32.mrf.mxu1 }
 0x19d   :  { %v368_v36 = vadd.f32 %v1083_v35, %v908_v34 }
 0x19e   :  { %v362_v37 = vpop.f32.mrf.mxu1 }
 0x19f   :  { %v363_v38 = vadd.f32 %v908_v34, %v362_v37  ;;  %v442_v41 = vmax.f32 %v368_v36, 0.0 }
 0x1a0   :  { %v1086_v39 = vpop.f32.mrf.mxu1 }
 0x1a1   :  { %v441_v40 = vmax.f32 %v363_v38, 0.0  ;;  %v378_v42 = vadd.f32 %v1086_v39, %v908_v34 }
 0x1a2   :  { %v372_v43 = vpop.f32.mrf.mxu1 }
 0x1a3   :  { %v373_v44 = vadd.f32 %v908_v34, %v372_v43  ;;  %1121 = vmatprep.mubr.msk.f32.mxu0 %vm472_vm2, %v441_v40  ;;  %v444_v48 = vmax.f32 %v378_v42, 0.0 }
 0x1a4   :  { %v1089_v45 = vpop.f32.mrf.mxu1  ;;  %1122 = vmatmul.mubr.msk.f32.vlgmr.msra.gmra.mxu0 %vm472_vm2, %v442_v41 }
 0x1a5   :  { %v443_v46 = vmax.f32 %v373_v44, 0.0  ;;  %v388_v47 = vadd.f32 %v1089_v45, %v908_v34 }
 0x1a6   :  { %v382_v49 = vpop.f32.mrf.mxu1 }
 0x1a7   :  { %v383_v50 = vadd.f32 %v908_v34, %v382_v49  ;;  %1124 = vmatprep.mubr.msk.f32.mxu0 %vm472_vm2, %v443_v46  ;;  %v446_v51 = vmax.f32 %v388_v47, 0.0 }
 0x1a8   :  { %v1092_v52 = vpop.f32.mrf.mxu1  ;;  %1125 = vmatmul.mubr.msk.f32.gmra.mxu0 %vm472_vm2, %v444_v48 }
 0x1a9   :  { %v445_v53 = vmax.f32 %v383_v50, 0.0  ;;  %v398_v54 = vadd.f32 %v1092_v52, %v908_v34 }
 0x1aa   :  { %v392_v55 = vpop.f32.mrf.mxu1 }
 0x1ab   :  { %v393_v56 = vadd.f32 %v908_v34, %v392_v55  ;;  %1127 = vmatprep.mubr.msk.f32.mxu0 %vm472_vm2, %v445_v53  ;;  %v448_v57 = vmax.f32 %v398_v54, 0.0 }
 0x1ac   :  { %v1095_v58 = vpop.f32.mrf.mxu1  ;;  %1128 = vmatmul.mubr.msk.f32.gmra.mxu0 %vm472_vm2, %v446_v51 }
 0x1ad   :  { %v447_v59 = vmax.f32 %v393_v56, 0.0  ;;  %v408_v60 = vadd.f32 %v1095_v58, %v908_v34 }
 0x1ae   :  { %v402_v61 = vpop.f32.mrf.mxu1 }
 0x1af   :  { %v403_v62 = vadd.f32 %v908_v34, %v402_v61  ;;  %1130 = vmatprep.mubr.msk.f32.mxu0 %vm472_vm2, %v447_v59  ;;  %v450_v63 = vmax.f32 %v408_v60, 0.0 }
 0x1b0   :  { %v1098_v0 = vpop.f32.mrf.mxu1  ;;  %1131 = vmatmul.mubr.msk.f32.gmra.mxu0 %vm472_vm2, %v448_v57 }
 0x1b1   :  { %v449_v1 = vmax.f32 %v403_v62, 0.0  ;;  %v418_v2 = vadd.f32 %v1098_v0, %v908_v34 }
 0x1b2   :  { %v412_v3 = vpop.f32.mrf.mxu1 }
 0x1b3   :  { %v413_v4 = vadd.f32 %v908_v34, %v412_v3  ;;  %1133 = vmatprep.mubr.msk.f32.mxu0 %vm472_vm2, %v449_v1  ;;  %v452_v5 = vmax.f32 %v418_v2, 0.0 }
 0x1b4   :  { %v1101_v6 = vpop.f32.mrf.mxu1  ;;  %1134 = vmatmul.mubr.msk.f32.gmra.mxu0 %vm472_vm2, %v450_v63 }
 0x1b5   :  { %v451_v7 = vmax.f32 %v413_v4, 0.0  ;;  %v428_v8 = vadd.f32 %v1101_v6, %v908_v34 }
 0x1b6   :  { %v422_v9 = vpop.f32.mrf.mxu1 }
 0x1b7   :  { %v423_v10 = vadd.f32 %v908_v34, %v422_v9  ;;  %1136 = vmatprep.mubr.msk.f32.mxu0 %vm472_vm2, %v451_v7  ;;  %v454_v11 = vmax.f32 %v428_v8, 0.0 }
 0x1b8   :  { %v1104_v12 = vpop.f32.mrf.mxu1  ;;  %1137 = vmatmul.mubr.msk.f32.gmra.mxu0 %vm472_vm2, %v452_v5 }
 0x1b9   :  { %v453_v13 = vmax.f32 %v423_v10, 0.0  ;;  %v438_v14 = vadd.f32 %v1104_v12, %v908_v34 }
 0x1ba   :  { %v432_v15 = vpop.f32.mrf.mxu1 }
 0x1bb   :  { %v433_v16 = vadd.f32 %v908_v34, %v432_v15  ;;  %1139 = vmatprep.mubr.msk.f32.mxu1 %vm472_vm2, %v453_v13  ;;  %v456_v17 = vmax.f32 %v438_v14, 0.0 }
 0x1bc   :  { %1140 = vmatmul.mubr.msk.f32.vlgmr.msra.gmra.mxu1 %vm472_vm2, %v454_v11 }
 0x1bd   :  { %v455_v18 = vmax.f32 %v433_v16, 0.0 }
 0x1bf   :  { %1142 = vmatprep.mubr.msk.f32.mxu1 %vm472_vm2, %v455_v18 }
 0x1c0   :  { %1143 = vmatmul.mubr.msk.f32.gmra.mxu1 %vm472_vm2, %v456_v17 }
 0x264   :  { %v1123_v19 = vpop.f32.mrf.mxu0 }
 0x265   :  { %v1497_v24 = vadd.f32 %v1123_v19, %v909_v20 }
 0x266   :  { %v587_v21 = vpop.f32.mrf.mxu0 }
 0x267   :  { %v1495_v22 = vadd.f32 %v909_v20, %v587_v21  ;;  %v670_v31 = vsel %vm666_vm3, %v1497_v24, -inf }
 0x268   :  { %v1126_v23 = vpop.f32.mrf.mxu0 }
 0x269   :  { %v667_v25 = vsel %vm666_vm3, %v1495_v22, -inf  ;;  %v1503_v29 = vadd.f32 %v1126_v23, %v909_v20 }
 0x26a   :  { %v597_v26 = vpop.f32.mrf.mxu0  ;;  %668 = vmax.xlane.f32.xlu0 %v667_v25 }
 0x26b   :  { %v1501_v27 = vadd.f32 %v909_v20, %v597_v26  ;;  %v676_v36 = vsel %vm666_vm3, %v1503_v29, -inf }
 0x26c   :  { %v1129_v28 = vpop.f32.mrf.mxu0 }
 0x26d   :  { %v673_v30 = vsel %vm666_vm3, %v1501_v27, -inf  ;;  %v1511_v35 = vadd.f32 %v1129_v28, %v909_v20 }
 0x26e   :  { %v607_v32 = vpop.f32.mrf.mxu0  ;;  %674 = vmax.xlane.f32.xlu1 %v673_v30  ;;  %671 = vmax.xlane.f32.xlu0 %v670_v31 }
 0x26f   :  { %v1509_v33 = vadd.f32 %v909_v20, %v607_v32  ;;  %v682_v42 = vsel %vm666_vm3, %v1511_v35, -inf }
 0x270   :  { %v1132_v34 = vpop.f32.mrf.mxu0 }
 0x271   :  { %v679_v37 = vsel %vm666_vm3, %v1509_v33, -inf  ;;  %v1517_v39 = vadd.f32 %v1132_v34, %v909_v20 }
 0x272   :  { %v617_v38 = vpop.f32.mrf.mxu0  ;;  %677 = vmax.xlane.f32.xlu1 %v676_v36  ;;  %680 = vmax.xlane.f32.xlu0 %v679_v37 }
 0x273   :  { %v1519_v40 = vadd.f32 %v909_v20, %v617_v38  ;;  %v688_v47 = vsel %vm666_vm3, %v1517_v39, -inf }
 0x274   :  { %v1135_v41 = vpop.f32.mrf.mxu0 }
 0x275   :  { %v685_v43 = vsel %vm666_vm3, %v1519_v40, -inf  ;;  %v1525_v45 = vadd.f32 %v1135_v41, %v909_v20 }
 0x276   :  { %v627_v44 = vpop.f32.mrf.mxu0  ;;  %683 = vmax.xlane.f32.xlu1 %v682_v42  ;;  %686 = vmax.xlane.f32.xlu0 %v685_v43 }
 0x277   :  { %v1527_v46 = vadd.f32 %v909_v20, %v627_v44  ;;  %v694_v53 = vsel %vm666_vm3, %v1525_v45, -inf }
 0x278   :  { %v1138_v48 = vpop.f32.mrf.mxu0 }
 0x279   :  { %v691_v49 = vsel %vm666_vm3, %v1527_v46, -inf  ;;  %v1533_v51 = vadd.f32 %v1138_v48, %v909_v20 }
 0x27a   :  { %v637_v50 = vpop.f32.mrf.mxu0  ;;  %689 = vmax.xlane.f32.xlu1 %v688_v47  ;;  %692 = vmax.xlane.f32.xlu0 %v691_v49 }
 0x27b   :  { %v1535_v52 = vadd.f32 %v909_v20, %v637_v50  ;;  %v700_v59 = vsel %vm666_vm3, %v1533_v51, -inf }
 0x27c   :  { %v1141_v54 = vpop.f32.mrf.mxu1 }
 0x27d   :  { %v697_v55 = vsel %vm666_vm3, %v1535_v52, -inf  ;;  %v1541_v57 = vadd.f32 %v1141_v54, %v909_v20 }
 0x27e   :  { %v647_v56 = vpop.f32.mrf.mxu1  ;;  %695 = vmax.xlane.f32.xlu1 %v694_v53  ;;  %698 = vmax.xlane.f32.xlu0 %v697_v55 }
 0x27f   :  { %v1543_v58 = vadd.f32 %v909_v20, %v647_v56  ;;  %v706_v1 = vsel %vm666_vm3, %v1541_v57, -inf }
 0x280   :  { %v1144_v60 = vpop.f32.mrf.mxu1 }
 0x281   :  { %v703_v61 = vsel %vm666_vm3, %v1543_v58, -inf  ;;  %v1549_v63 = vadd.f32 %v1144_v60, %v909_v20 }
 0x282   :  { %v657_v62 = vpop.f32.mrf.mxu1  ;;  %701 = vmax.xlane.f32.xlu1 %v700_v59  ;;  %704 = vmax.xlane.f32.xlu0 %v703_v61 }
 0x283   :  { %v1551_v0 = vadd.f32 %v909_v20, %v657_v62  ;;  %v712_v3 = vsel %vm666_vm3, %v1549_v63, -inf }
 0x285   :  { %v709_v2 = vsel %vm666_vm3, %v1551_v0, -inf }
 0x286   :  { %707 = vmax.xlane.f32.xlu1 %v706_v1  ;;  %710 = vmax.xlane.f32.xlu0 %v709_v2 }
 0x28a   :  { %713 = vmax.xlane.f32.xlu1 %v712_v3 }
 0x2f3   :  { %v669_v4 = vpop.xlane.xlu0 %668 }
 0x2f4   :  { %v715_v5 = vsub.f32 %v1495_v22, %v669_v4 }
 0x2f6   :  { %v731_v6 = vmul.f32 1.442695, %v715_v5 }
 0x2f7   :  { %v675_v7 = vpop.xlane.xlu1 %674  ;;  %v672_v8 = vpop.xlane.xlu0 %671 }
 0x2f8   :  { %1162 = vpow2.f32 %v731_v6  ;;  %v717_v9 = vsub.f32 %v1501_v27, %v675_v7  ;;  %v716_v10 = vsub.f32 %v1497_v24, %v672_v8 }
 0x2fa   :  { %v735_v11 = vmul.f32 1.442695, %v717_v9  ;;  %v733_v12 = vmul.f32 1.442695, %v716_v10 }
 0x2fb   :  { %v678_v13 = vpop.xlane.xlu1 %677  ;;  %v681_v14 = vpop.xlane.xlu0 %680 }
 0x2fc   :  { %1164 = vpow2.f32 %v735_v11  ;;  %v718_v15 = vsub.f32 %v1503_v29, %v678_v13  ;;  %v719_v16 = vsub.f32 %v1509_v33, %v681_v14 }
 0x2fd   :  { %1166 = vpow2.f32 %v733_v12 }
 0x2fe   :  { %v737_v17 = vmul.f32 1.442695, %v718_v15  ;;  %v739_v18 = vmul.f32 1.442695, %v719_v16 }
 0x2ff   :  { %v684_v19 = vpop.xlane.xlu1 %683  ;;  %v687_v20 = vpop.xlane.xlu0 %686 }
 0x300   :  { %1168 = vpow2.f32 %v737_v17  ;;  %v720_v21 = vsub.f32 %v1511_v35, %v684_v19  ;;  %v721_v22 = vsub.f32 %v1519_v40, %v687_v20 }
 0x301   :  { %1170 = vpow2.f32 %v739_v18 }
 0x302   :  { %v741_v23 = vmul.f32 1.442695, %v720_v21  ;;  %v743_v24 = vmul.f32 1.442695, %v721_v22 }
 0x303   :  { %v690_v25 = vpop.xlane.xlu1 %689  ;;  %v693_v26 = vpop.xlane.xlu0 %692 }
 0x304   :  { %1172 = vpow2.f32 %v741_v23  ;;  %v722_v27 = vsub.f32 %v1517_v39, %v690_v25  ;;  %v723_v28 = vsub.f32 %v1527_v46, %v693_v26 }
 0x305   :  { %v1568_v29 = vpop.eup %1162  ;;  %1174 = vpow2.f32 %v743_v24 }
 0x306   :  { %v745_v30 = vmul.f32 1.442695, %v722_v27  ;;  %v747_v31 = vmul.f32 1.442695, %v723_v28  ;;  %v763_v32 = vsel %vm666_vm3, %v1568_v29, 0.0 }
 0x307   :  { %v696_v33 = vpop.xlane.xlu1 %695  ;;  %764 = vadd.xlane.f32.xlu0 %v763_v32  ;;  %v699_v34 = vpop.xlane.xlu0 %698 }
 0x308   :  { %1176 = vpow2.f32 %v745_v30  ;;  %v724_v35 = vsub.f32 %v1525_v45, %v696_v33  ;;  %v725_v36 = vsub.f32 %v1535_v52, %v699_v34 }
 0x309   :  { %v1574_v37 = vpop.eup %1164  ;;  %1178 = vpow2.f32 %v747_v31 }
 0x30a   :  { %v1576_v38 = vpop.eup %1166  ;;  %v749_v39 = vmul.f32 1.442695, %v724_v35  ;;  %v751_v40 = vmul.f32 1.442695, %v725_v36  ;;  %v769_v41 = vsel %vm666_vm3, %v1574_v37, 0.0 }
 0x30b   :  { %v702_v42 = vpop.xlane.xlu1 %701  ;;  %770 = vadd.xlane.f32.xlu0 %v769_v41  ;;  %v766_v43 = vsel %vm666_vm3, %v1576_v38, 0.0  ;;  %v705_v44 = vpop.xlane.xlu0 %704 }
 0x30c   :  { %1180 = vpow2.f32 %v749_v39  ;;  %v726_v45 = vsub.f32 %v1533_v51, %v702_v42  ;;  %767 = vadd.xlane.f32.xlu1 %v766_v43  ;;  %v727_v46 = vsub.f32 %v1543_v58, %v705_v44 }
 0x30d   :  { %v1584_v47 = vpop.eup %1168  ;;  %1182 = vpow2.f32 %v751_v40 }
 0x30e   :  { %v1586_v48 = vpop.eup %1170  ;;  %v753_v49 = vmul.f32 1.442695, %v726_v45  ;;  %v755_v50 = vmul.f32 1.442695, %v727_v46  ;;  %v772_v52 = vsel %vm666_vm3, %v1584_v47, 0.0 }
 0x30f   :  { %v708_v53 = vpop.xlane.xlu1 %707  ;;  %v775_v54 = vsel %vm666_vm3, %v1586_v48, 0.0  ;;  %v711_v55 = vpop.xlane.xlu0 %710 }
 0x310   :  { %1184 = vpow2.f32 %v753_v49  ;;  %v728_v51 = vsub.f32 %v1541_v57, %v708_v53  ;;  %773 = vadd.xlane.f32.xlu1 %v772_v52  ;;  %776 = vadd.xlane.f32.xlu0 %v775_v54  ;;  %v729_v56 = vsub.f32 %v1551_v0, %v711_v55 }
 0x311   :  { %v1594_v58 = vpop.eup %1172  ;;  %1186 = vpow2.f32 %v755_v50 }
 0x312   :  { %v1596_v59 = vpop.eup %1174  ;;  %v757_v60 = vmul.f32 1.442695, %v728_v51  ;;  %v759_v61 = vmul.f32 1.442695, %v729_v56  ;;  %v778_v62 = vsel %vm666_vm3, %v1594_v58, 0.0 }
 0x313   :  { %v714_v1 = vpop.xlane.xlu1 %713  ;;  %v781_v2 = vsel %vm666_vm3, %v1596_v59, 0.0 }
 0x314   :  { %1188 = vpow2.f32 %v757_v60  ;;  %v730_v57 = vsub.f32 %v1549_v63, %v714_v1  ;;  %779 = vadd.xlane.f32.xlu1 %v778_v62  ;;  %782 = vadd.xlane.f32.xlu0 %v781_v2 }
 0x315   :  { %v1603_v0 = vpop.eup %1176  ;;  %1190 = vpow2.f32 %v759_v61 }
 0x316   :  { %v1605_v3 = vpop.eup %1178  ;;  %v761_v4 = vmul.f32 1.442695, %v730_v57  ;;  %v784_v5 = vsel %vm666_vm3, %v1603_v0, 0.0 }
 0x317   :  { %v787_v6 = vsel %vm666_vm3, %v1605_v3, 0.0 }
 0x318   :  { %1192 = vpow2.f32 %v761_v4  ;;  %785 = vadd.xlane.f32.xlu1 %v784_v5  ;;  %788 = vadd.xlane.f32.xlu0 %v787_v6 }
 0x319   :  { %v1611_v7 = vpop.eup %1180 }
 0x31a   :  { %v1613_v63 = vpop.eup %1182  ;;  %v790_v8 = vsel %vm666_vm3, %v1611_v7, 0.0 }
 0x31b   :  { %v793_v9 = vsel %vm666_vm3, %v1613_v63, 0.0 }
 0x31c   :  { %791 = vadd.xlane.f32.xlu1 %v790_v8  ;;  %794 = vadd.xlane.f32.xlu0 %v793_v9 }
 0x31d   :  { %v1619_v10 = vpop.eup %1184 }
 0x31e   :  { %v1621_v11 = vpop.eup %1186  ;;  %v796_v12 = vsel %vm666_vm3, %v1619_v10, 0.0 }
 0x31f   :  { %v799_v13 = vsel %vm666_vm3, %v1621_v11, 0.0 }
 0x320   :  { %797 = vadd.xlane.f32.xlu1 %v796_v12  ;;  %800 = vadd.xlane.f32.xlu0 %v799_v13 }
 0x321   :  { %v1627_v14 = vpop.eup %1188 }
 0x322   :  { %v1629_v15 = vpop.eup %1190  ;;  %v802_v16 = vsel %vm666_vm3, %v1627_v14, 0.0 }
 0x323   :  { %v805_v17 = vsel %vm666_vm3, %v1629_v15, 0.0 }
 0x324   :  { %803 = vadd.xlane.f32.xlu1 %v802_v16  ;;  %806 = vadd.xlane.f32.xlu0 %v805_v17 }
 0x325   :  { %v1635_v18 = vpop.eup %1192 }
 0x326   :  { %v808_v19 = vsel %vm666_vm3, %v1635_v18, 0.0 }
 0x328   :  { %809 = vadd.xlane.f32.xlu1 %v808_v19 }
 0x390   :  { %v765_v20 = vpop.xlane.xlu0 %764 }
 0x391   :  { %1194 = vrcp.f32 %v765_v20 }
 0x394   :  { %v771_v22 = vpop.xlane.xlu0 %770 }
 0x395   :  { %v768_v21 = vpop.xlane.xlu1 %767 }
 0x396   :  { %1196 = vrcp.f32 %v768_v21 }
 0x397   :  { %1198 = vrcp.f32 %v771_v22 }
 0x399   :  { %v774_v23 = vpop.xlane.xlu1 %773  ;;  %v777_v24 = vpop.xlane.xlu0 %776 }
 0x39a   :  { %1200 = vrcp.f32 %v774_v23 }
 0x39b   :  { %1202 = vrcp.f32 %v777_v24 }
 0x39d   :  { %v780_v27 = vpop.xlane.xlu1 %779  ;;  %v783_v32 = vpop.xlane.xlu0 %782 }
 0x39e   :  { %v1195_v25 = vpop.eup %1194  ;;  %1204 = vrcp.f32 %v780_v27 }
 0x39f   :  { %v827_v26 = vmul.f32 %v1195_v25, %v1568_v29  ;;  %1206 = vrcp.f32 %v783_v32 }
 0x3a1   :  { %843 = vxpose.xlu0.b32.start [1/16] (narrow) %v827_v26, 8  ;;  %v786_v35 = vpop.xlane.xlu1 %785  ;;  %v789_v39 = vpop.xlane.xlu0 %788 }
 0x3a2   :  { %1208 = vrcp.f32 %v786_v35 }
 0x3a3   :  { %v1197_v28 = vpop.eup %1196  ;;  %1210 = vrcp.f32 %v789_v39 }
 0x3a4   :  { %v828_v30 = vmul.f32 %v1197_v28, %v1576_v38  ;;  %v1199_v31 = vpop.eup %1198 }
 0x3a5   :  { %v829_v33 = vmul.f32 %v1199_v31, %v1574_v37  ;;  %v792_v38 = vpop.xlane.xlu1 %791  ;;  %v795_v37 = vpop.xlane.xlu0 %794 }
 0x3a6   :  { %844 = vxpose.xlu0.b32.cont [2/16] (narrow) %v828_v30, 8  ;;  %1212 = vrcp.f32 %v792_v38 }
 0x3a7   :  { %v1201_v34 = vpop.eup %1200  ;;  %1214 = vrcp.f32 %v795_v37 }
 0x3a8   :  { %v830_v36 = vmul.f32 %v1201_v34, %v1584_v47  ;;  %v1203_v29 = vpop.eup %1202 }
 0x3a9   :  { %v831_v40 = vmul.f32 %v1203_v29, %v1586_v48  ;;  %v798_v46 = vpop.xlane.xlu1 %797  ;;  %v801_v48 = vpop.xlane.xlu0 %800 }
 0x3aa   :  { %845 = vxpose.xlu0.b32.cont [3/16] (narrow) %v829_v33, 8  ;;  %1216 = vrcp.f32 %v798_v46 }
 0x3ab   :  { %v1205_v41 = vpop.eup %1204  ;;  %1218 = vrcp.f32 %v801_v48 }
 0x3ac   :  { %v832_v42 = vmul.f32 %v1205_v41, %v1594_v58  ;;  %v1207_v43 = vpop.eup %1206 }
 0x3ad   :  { %v833_v44 = vmul.f32 %v1207_v43, %v1596_v59  ;;  %v804_v53 = vpop.xlane.xlu1 %803  ;;  %v807_v51 = vpop.xlane.xlu0 %806 }
 0x3ae   :  { %846 = vxpose.xlu0.b32.cont [4/16] (narrow) %v830_v36, 8  ;;  %1220 = vrcp.f32 %v804_v53 }
 0x3af   :  { %v1209_v45 = vpop.eup %1208  ;;  %1222 = vrcp.f32 %v807_v51 }
 0x3b0   :  { %v834_v47 = vmul.f32 %v1209_v45, %v1603_v0  ;;  %v1211_v49 = vpop.eup %1210 }
 0x3b1   :  { %v835_v50 = vmul.f32 %v1211_v49, %v1605_v3  ;;  %v810_v59 = vpop.xlane.xlu1 %809 }
 0x3b2   :  { %847 = vxpose.xlu0.b32.cont [5/16] (narrow) %v831_v40, 8  ;;  %1224 = vrcp.f32 %v810_v59 }
 0x3b3   :  { %v1213_v52 = vpop.eup %1212 }
 0x3b4   :  { %v836_v54 = vmul.f32 %v1213_v52, %v1611_v7  ;;  %v1215_v55 = vpop.eup %1214 }
 0x3b5   :  { %v837_v56 = vmul.f32 %v1215_v55, %v1613_v63 }
 0x3b6   :  { %848 = vxpose.xlu0.b32.cont [6/16] (narrow) %v832_v42, 8 }
 0x3b7   :  { %v1217_v58 = vpop.eup %1216 }
 0x3b8   :  { %v838_v60 = vmul.f32 %v1217_v58, %v1619_v10  ;;  %v1219_v61 = vpop.eup %1218 }
 0x3b9   :  { %v839_v62 = vmul.f32 %v1219_v61, %v1621_v11 }
 0x3ba   :  { %849 = vxpose.xlu0.b32.cont [7/16] (narrow) %v833_v44, 8 }
 0x3bb   :  { %v1221_v1 = vpop.eup %1220 }
 0x3bc   :  { %v840_v2 = vmul.f32 %v1221_v1, %v1627_v14  ;;  %v1223_v57 = vpop.eup %1222 }
 0x3bd   :  { %v841_v0 = vmul.f32 %v1223_v57, %v1629_v15 }
 0x3be   :  { %850 = vxpose.xlu0.b32.cont [8/16] (narrow) %v834_v47, 8 }
 0x3bf   :  { %v1225_v3 = vpop.eup %1224 }
 0x3c0   :  { %v842_v4 = vmul.f32 %v1225_v3, %v1635_v18 }
 0x3c2   :  { %851 = vxpose.xlu0.b32.cont [9/16] (narrow) %v835_v50, 8 }
 0x3c6   :  { %852 = vxpose.xlu0.b32.cont [10/16] (narrow) %v836_v54, 8 }
 0x3ca   :  { %853 = vxpose.xlu0.b32.cont [11/16] (narrow) %v837_v56, 8 }
 0x3ce   :  { %854 = vxpose.xlu0.b32.cont [12/16] (narrow) %v838_v60, 8 }
 0x3d2   :  { %855 = vxpose.xlu0.b32.cont [13/16] (narrow) %v839_v62, 8 }
 0x3d6   :  { %856 = vxpose.xlu0.b32.cont [14/16] (narrow) %v840_v2, 8 }
 0x3da   :  { %857 = vxpose.xlu0.b32.cont [15/16] (narrow) %v841_v0, 8 }
 0x3de   :  { %858 = vxpose.xlu0.b32.end [16/16] (narrow) %v842_v4, 8 }
 0x41e   :  { %v859_v5 = vpop.trf.xlu0 }
 0x41f   :  { %875 = vst [vmem:[#allocation2] sm:$0x3f] %v859_v5 }
 0x420   :  { %1237 = shalt.err (!%p1234_p4)
}
 0x421   :  { %885 = dma.vmem_to_hbm [thread:$0]  %s883_s28, 128, %s1665_s7, [#allocation3]  }
 0x422   :  { %1246 = dma.done.wait [#allocation3], 128  }
 0x423   :  { %1247 = vsyncadd [#allocation3], 4294967168 }
 0x424   :  { %889 = vsyncpa [#allocation3], 1 }

// kernel: tpu_custom_call.1
= control target key start
LH: loop header
LB: loop body
LE: loop exit
PB: predicated region body
PF: predicated region fallthrough
CT: control target
= control target key end

     0   :  { %vm107_vm0 = vcmask 1040384   ;;  %vm58_vm1 = vcmask 531456   ;;  %vm471_vm2 = vcmask 523264   ;;  %vm665_vm3 = vcmask 48128   ;;  %s1608_s0 = inlined_call_operand.vmem [shape: f32[20,65], index: 0, kind: input, shape index: {}]   ;;  %s1609_s1 = inlined_call_operand.vmem [shape: f32[65,128], index: 1, kind: input, shape index: {}]   ;;  %s1610_s2 = inlined_call_operand.vmem [shape: f32[1,128], index: 2, kind: input, shape index: {}]   ;;  %s1611_s3 = inlined_call_operand.vmem [shape: f32[128,64], index: 3, kind: input, shape index: {}]   ;;  %s1612_s4 = inlined_call_operand.vmem [shape: f32[1,64], index: 4, kind: input, shape index: {}]   ;;  %s1613_s5 = inlined_call_operand.vmem [shape: f32[64,6], index: 5, kind: input, shape index: {}]   ;;  %s1614_s6 = inlined_call_operand.vmem [shape: f32[1,6], index: 6, kind: input, shape index: {}]   ;;  %s1615_s7 = inlined_call_operand.vmem [shape: f32[20,6], index: 7, kind: output, shape index: {}]  }
   0x1   :  { %v50_v0 = vld [vmem:[%s1609_s1 + $0x40] sm:$0x1]  ;;  %v49_v1 = vld [vmem:[%s1609_s1 + $0x38] sm:$0xff]  ;;  %v48_v2 = vld [vmem:[%s1609_s1 + $0x30] sm:$0xff] }
   0x2   :  { %1024 = vmatprep.subr.msk.mxu0 %vm107_vm0, %v50_v0  ;;  %v26_v3 = vld [vmem:[%s1608_s0] sm:$0xff]  ;;  %v47_v4 = vld [vmem:[%s1609_s1 + $0x28] sm:$0xff]  ;;  %v45_v6 = vld [vmem:[%s1609_s1 + $0x18] sm:$0xff] }
   0x3   :  { %1025 = vmatpush3.msk.msra.mxu0 %vm107_vm0, %v50_v0  ;;  %1042 = vmatprep.mubr.msk.f32.mxu0 %vm58_vm1, %v26_v3  ;;  %v46_v5 = vld [vmem:[%s1609_s1 + $0x20] sm:$0xff]  ;;  %v287_v7 = vld [vmem:[%s1611_s3 + $0x78] sm:$0xff]  ;;  %v286_v8 = vld [vmem:[%s1611_s3 + $0x70] sm:$0xff] }
   0x4   :  { %1026 = vmatprep.subr.mxu0 %v49_v1  ;;  %1066 = vmatprep.subr.mxu1 %v287_v7  ;;  %v44_v9 = vld [vmem:[%s1609_s1 + $0x10] sm:$0xff]  ;;  %v285_v10 = vld [vmem:[%s1611_s3 + $0x68] sm:$0xff]  ;;  %v284_v12 = vld [vmem:[%s1611_s3 + $0x60] sm:$0xff] }
   0x5   :  { %1027 = vmatpush3.msra.mxu0 %v49_v1  ;;  %1067 = vmatpush3.msra.mxu1 %v287_v7  ;;  %v43_v11 = vld [vmem:[%s1609_s1 + $0x8] sm:$0xff]  ;;  %v42_v13 = vld [vmem:[%s1609_s1] sm:$0xff]  ;;  %v283_v14 = vld [vmem:[%s1611_s3 + $0x58] sm:$0xff] }
   0x6   :  { %1028 = vmatprep.subr.mxu0 %v48_v2  ;;  %1068 = vmatprep.subr.mxu1 %v286_v8  ;;  %v27_v15 = vld [vmem:[%s1608_s0 + $0x8] sm:$0xff]  ;;  %v282_v16 = vld [vmem:[%s1611_s3 + $0x50] sm:$0xff]  ;;  %v29_v19 = vld [vmem:[%s1608_s0 + $0x18] sm:$0xff] }
   0x7   :  { %1029 = vmatpush3.msra.mxu0 %v48_v2  ;;  %1069 = vmatpush3.msra.mxu1 %v286_v8  ;;  %v28_v17 = vld [vmem:[%s1608_s0 + $0x10] sm:$0xff]  ;;  %v281_v18 = vld [vmem:[%s1611_s3 + $0x48] sm:$0xff]  ;;  %v280_v20 = vld [vmem:[%s1611_s3 + $0x40] sm:$0xff] }
   0x8   :  { %1030 = vmatprep.subr.mxu0 %v47_v4  ;;  %1070 = vmatprep.subr.mxu1 %v285_v10  ;;  %v30_v21 = vld [vmem:[%s1608_s0 + $0x20] sm:$0xff]  ;;  %v279_v22 = vld [vmem:[%s1611_s3 + $0x38] sm:$0xff]  ;;  %v31_v23 = vld [vmem:[%s1608_s0 + $0x28] sm:$0xff] }
   0x9   :  { %1031 = vmatpush3.msra.mxu0 %v47_v4  ;;  %1071 = vmatpush3.msra.mxu1 %v285_v10  ;;  %v278_v24 = vld [vmem:[%s1611_s3 + $0x30] sm:$0xff]  ;;  %v277_v26 = vld [vmem:[%s1611_s3 + $0x28] sm:$0xff]  ;;  %v33_v27 = vld [vmem:[%s1608_s0 + $0x38] sm:$0xff] }
   0xa   :  { %1032 = vmatprep.subr.mxu0 %v46_v5  ;;  %1072 = vmatprep.subr.mxu1 %v284_v12  ;;  %v32_v25 = vld [vmem:[%s1608_s0 + $0x30] sm:$0xff]  ;;  %v276_v28 = vld [vmem:[%s1611_s3 + $0x20] sm:$0xff]  ;;  %v35_v30 = vld [vmem:[%s1608_s0 + $0x48] sm:$0xff] }
   0xb   :  { %1033 = vmatpush3.msra.mxu0 %v46_v5  ;;  %1073 = vmatpush3.msra.mxu1 %v284_v12  ;;  %v34_v29 = vld [vmem:[%s1608_s0 + $0x40] sm:$0xff]  ;;  %v36_v31 = vld [vmem:[%s1608_s0 + $0x50] sm:$0xff]  ;;  %v37_v32 = vld [vmem:[%s1608_s0 + $0x58] sm:$0xff] }
   0xc   :  { %1034 = vmatprep.subr.mxu0 %v45_v6  ;;  %1074 = vmatprep.subr.mxu1 %v283_v14  ;;  %v38_v33 = vld [vmem:[%s1608_s0 + $0x60] sm:$0xff]  ;;  %v39_v34 = vld [vmem:[%s1608_s0 + $0x68] sm:$0xff]  ;;  %v40_v35 = vld [vmem:[%s1608_s0 + $0x70] sm:$0xff] }
   0xd   :  { %1035 = vmatpush3.msra.mxu0 %v45_v6  ;;  %1075 = vmatpush3.msra.mxu1 %v283_v14  ;;  %v41_v36 = vld [vmem:[%s1608_s0 + $0x78] sm:$0xff]  ;;  %v274_v38 = vld [vmem:[%s1611_s3 + $0x10] sm:$0xff]  ;;  %v273_v39 = vld [vmem:[%s1611_s3 + $0x8] sm:$0xff] }
   0xe   :  { %1036 = vmatprep.subr.mxu0 %v44_v9  ;;  %1076 = vmatprep.subr.mxu1 %v282_v16  ;;  %v275_v37 = vld [vmem:[%s1611_s3 + $0x18] sm:$0xff]  ;;  %v272_v40 = vld [vmem:[%s1611_s3] sm:$0xff]  ;;  %v462_v42 = vld [vmem:[%s1613_s5 + $0x30] sm:$0xff] }
   0xf   :  { %1037 = vmatpush3.msra.mxu0 %v44_v9  ;;  %1077 = vmatpush3.msra.mxu1 %v282_v16  ;;  %v463_v41 = vld [vmem:[%s1613_s5 + $0x38] sm:$0xff]  ;;  %v461_v43 = vld [vmem:[%s1613_s5 + $0x28] sm:$0xff]  ;;  %v460_v44 = vld [vmem:[%s1613_s5 + $0x20] sm:$0xff] }
  0x10   :  { %1038 = vmatprep.subr.mxu0 %v43_v11  ;;  %1078 = vmatprep.subr.mxu1 %v281_v18  ;;  %v459_v45 = vld [vmem:[%s1613_s5 + $0x18] sm:$0xff]  ;;  %v458_v46 = vld [vmem:[%s1613_s5 + $0x10] sm:$0xff]  ;;  %v457_v47 = vld [vmem:[%s1613_s5 + $0x8] sm:$0xff] }
  0x11   :  { %1039 = vmatpush3.msra.mxu0 %v43_v11  ;;  %1079 = vmatpush3.msra.mxu1 %v281_v18  ;;  %v1445_v48 = vld [vmem:[%s1610_s2] ss:$0 sm:$0xff] }
  0x12   :  { %1040 = vmatprep.subr.mxu0 %v42_v13  ;;  %1080 = vmatprep.subr.mxu1 %v280_v20 }
  0x13   :  { %1041 = vmatpush3.msra.mxu0 %v42_v13  ;;  %1081 = vmatpush3.msra.mxu1 %v280_v20 }
  0x14   :  { %1043 = vmatmul.mubr.msk.f32.vlgmr.msra.gmra.mxu0 %vm58_vm1, %v27_v15  ;;  %1082 = vmatprep.subr.mxu1 %v279_v22 }
  0x15   :  { %1045 = vmatprep.mubr.msk.f32.mxu0 %vm58_vm1, %v28_v17  ;;  %1083 = vmatpush3.msra.mxu1 %v279_v22 }
  0x16   :  { %1084 = vmatprep.subr.mxu1 %v278_v24  ;;  %1122 = vmatprep.subr.mxu0 %v463_v41 }
  0x17   :  { %1085 = vmatpush3.msra.mxu1 %v278_v24  ;;  %1123 = vmatpush3.msra.mxu0 %v463_v41 }
  0x18   :  { %1046 = vmatmul.mubr.msk.f32.gmra.mxu0 %vm58_vm1, %v29_v19  ;;  %1086 = vmatprep.subr.mxu1 %v277_v26 }
  0x19   :  { %1048 = vmatprep.mubr.msk.f32.mxu0 %vm58_vm1, %v30_v21  ;;  %1087 = vmatpush3.msra.mxu1 %v277_v26 }
  0x1a   :  { %1088 = vmatprep.subr.mxu1 %v276_v28  ;;  %1124 = vmatprep.subr.mxu0 %v462_v42 }
  0x1b   :  { %1089 = vmatpush3.msra.mxu1 %v276_v28  ;;  %1125 = vmatpush3.msra.mxu0 %v462_v42 }
  0x1c   :  { %1049 = vmatmul.mubr.msk.f32.gmra.mxu0 %vm58_vm1, %v31_v23  ;;  %1090 = vmatprep.subr.mxu1 %v275_v37 }
  0x1d   :  { %1051 = vmatprep.mubr.msk.f32.mxu0 %vm58_vm1, %v32_v25  ;;  %1091 = vmatpush3.msra.mxu1 %v275_v37 }
  0x1e   :  { %1092 = vmatprep.subr.mxu1 %v274_v38  ;;  %1126 = vmatprep.subr.mxu0 %v461_v43 }
  0x1f   :  { %1093 = vmatpush3.msra.mxu1 %v274_v38  ;;  %1127 = vmatpush3.msra.mxu0 %v461_v43 }
  0x20   :  { %1052 = vmatmul.mubr.msk.f32.gmra.mxu0 %vm58_vm1, %v33_v27  ;;  %1094 = vmatprep.subr.mxu1 %v273_v39 }
  0x21   :  { %1054 = vmatprep.mubr.msk.f32.mxu0 %vm58_vm1, %v34_v29  ;;  %1095 = vmatpush3.msra.mxu1 %v273_v39 }
  0x22   :  { %1096 = vmatprep.subr.mxu1 %v272_v40  ;;  %1128 = vmatprep.subr.mxu0 %v460_v44 }
  0x23   :  { %1097 = vmatpush3.msra.mxu1 %v272_v40  ;;  %1129 = vmatpush3.msra.mxu0 %v460_v44 }
  0x24   :  { %1055 = vmatmul.mubr.msk.f32.gmra.mxu0 %vm58_vm1, %v35_v30  ;;  %1162 = vmatprep.subr.mxu1 %v463_v41 }
  0x25   :  { %1057 = vmatprep.mubr.msk.f32.mxu0 %vm58_vm1, %v36_v31  ;;  %1130 = vmatprep.subr.mxu0 %v459_v45 }
  0x26   :  { %1131 = vmatpush3.msra.mxu0 %v459_v45 }
  0x27   :  { %1132 = vmatprep.subr.mxu0 %v458_v46 }
  0x28   :  { %1058 = vmatmul.mubr.msk.f32.gmra.mxu0 %vm58_vm1, %v37_v32 }
  0x29   :  { %1060 = vmatprep.mubr.msk.f32.mxu0 %vm58_vm1, %v38_v33  ;;  %1133 = vmatpush3.msra.mxu0 %v458_v46  ;;  %v456_v33 = vld [vmem:[%s1613_s5] sm:$0xff] }
  0x2a   :  { %1134 = vmatprep.subr.mxu0 %v457_v47 }
  0x2b   :  { %1135 = vmatpush3.msra.mxu0 %v457_v47 }
  0x2c   :  { %1061 = vmatmul.mubr.msk.f32.gmra.mxu0 %vm58_vm1, %v39_v34  ;;  %1136 = vmatprep.subr.mxu0 %v456_v33  ;;  %v925_v34 = vld [vmem:[%s1612_s4] ss:$0 sm:$0xff] }
  0x2d   :  { %1063 = vmatprep.mubr.msk.f32.mxu0 %vm58_vm1, %v40_v35  ;;  %1137 = vmatpush3.msra.mxu0 %v456_v33 }
  0x30   :  { %1064 = vmatmul.mubr.msk.f32.gmra.mxu0 %vm58_vm1, %v41_v36 }
  0xd4   :  { %v1044_v49 = vpop.f32.mrf.mxu0 }
  0xd5   :  { %v183_v50 = vadd.f32 %v1044_v49, %v1445_v48 }
  0xd6   :  { %v177_v51 = vpop.f32.mrf.mxu0 }
  0xd7   :  { %v178_v52 = vadd.f32 %v1445_v48, %v177_v51  ;;  %v257_v55 = vmax.f32 %v183_v50, 0.0 }
  0xd8   :  { %v1047_v53 = vpop.f32.mrf.mxu0 }
  0xd9   :  { %v256_v54 = vmax.f32 %v178_v52, 0.0  ;;  %v193_v56 = vadd.f32 %v1047_v53, %v1445_v48 }
  0xda   :  { %v187_v57 = vpop.f32.mrf.mxu0 }
  0xdb   :  { %v188_v58 = vadd.f32 %v1445_v48, %v187_v57  ;;  %1098 = vmatprep.mubr.f32.mxu1 %v256_v54  ;;  %v259_v62 = vmax.f32 %v193_v56, 0.0 }
  0xdc   :  { %v1050_v59 = vpop.f32.mrf.mxu0  ;;  %1099 = vmatmul.mubr.f32.vlgmr.msra.gmra.mxu1 %v257_v55 }
  0xdd   :  { %v258_v60 = vmax.f32 %v188_v58, 0.0  ;;  %v203_v61 = vadd.f32 %v1050_v59, %v1445_v48  ;;  %1170 = vmatpush3.msra.mxu1 %v463_v41 }
  0xde   :  { %v197_v63 = vpop.f32.mrf.mxu0  ;;  %1163 = vmatprep.subr.mxu1 %v462_v42 }
  0xdf   :  { %v198_v0 = vadd.f32 %v1445_v48, %v197_v63  ;;  %1101 = vmatprep.mubr.f32.mxu1 %v258_v60  ;;  %1171 = vmatpush3.msra.mxu1 %v462_v42  ;;  %v261_v1 = vmax.f32 %v203_v61, 0.0 }
  0xe0   :  { %v1053_v2 = vpop.f32.mrf.mxu0  ;;  %1102 = vmatmul.mubr.f32.gmra.mxu1 %v259_v62  ;;  %1164 = vmatprep.subr.mxu1 %v461_v43 }
  0xe1   :  { %v260_v3 = vmax.f32 %v198_v0, 0.0  ;;  %v213_v4 = vadd.f32 %v1053_v2, %v1445_v48  ;;  %1172 = vmatpush3.msra.mxu1 %v461_v43 }
  0xe2   :  { %v207_v5 = vpop.f32.mrf.mxu0  ;;  %1165 = vmatprep.subr.mxu1 %v460_v44 }
  0xe3   :  { %v208_v6 = vadd.f32 %v1445_v48, %v207_v5  ;;  %1104 = vmatprep.mubr.f32.mxu1 %v260_v3  ;;  %1173 = vmatpush3.msra.mxu1 %v460_v44  ;;  %v263_v7 = vmax.f32 %v213_v4, 0.0 }
  0xe4   :  { %v1056_v8 = vpop.f32.mrf.mxu0  ;;  %1105 = vmatmul.mubr.f32.gmra.mxu1 %v261_v1  ;;  %1166 = vmatprep.subr.mxu1 %v459_v45 }
  0xe5   :  { %v262_v9 = vmax.f32 %v208_v6, 0.0  ;;  %v223_v10 = vadd.f32 %v1056_v8, %v1445_v48  ;;  %1174 = vmatpush3.msra.mxu1 %v459_v45 }
  0xe6   :  { %v217_v11 = vpop.f32.mrf.mxu0  ;;  %1167 = vmatprep.subr.mxu1 %v458_v46 }
  0xe7   :  { %v218_v12 = vadd.f32 %v1445_v48, %v217_v11  ;;  %1107 = vmatprep.mubr.f32.mxu1 %v262_v9  ;;  %1175 = vmatpush3.msra.mxu1 %v458_v46  ;;  %v265_v13 = vmax.f32 %v223_v10, 0.0 }
  0xe8   :  { %v1059_v14 = vpop.f32.mrf.mxu0  ;;  %1108 = vmatmul.mubr.f32.gmra.mxu1 %v263_v7  ;;  %1168 = vmatprep.subr.mxu1 %v457_v47 }
  0xe9   :  { %v264_v15 = vmax.f32 %v218_v12, 0.0  ;;  %v233_v16 = vadd.f32 %v1059_v14, %v1445_v48  ;;  %1176 = vmatpush3.msra.mxu1 %v457_v47 }
  0xea   :  { %v227_v17 = vpop.f32.mrf.mxu0  ;;  %1169 = vmatprep.subr.mxu1 %v456_v33 }
  0xeb   :  { %v228_v18 = vadd.f32 %v1445_v48, %v227_v17  ;;  %1110 = vmatprep.mubr.f32.mxu1 %v264_v15  ;;  %v267_v19 = vmax.f32 %v233_v16, 0.0  ;;  %1177 = vmatpush3.msra.mxu1 %v456_v33 }
  0xec   :  { %v1062_v20 = vpop.f32.mrf.mxu0  ;;  %1111 = vmatmul.mubr.f32.gmra.mxu1 %v265_v13 }
  0xed   :  { %v266_v21 = vmax.f32 %v228_v18, 0.0  ;;  %v243_v22 = vadd.f32 %v1062_v20, %v1445_v48 }
  0xee   :  { %v237_v23 = vpop.f32.mrf.mxu0 }
  0xef   :  { %v238_v24 = vadd.f32 %v1445_v48, %v237_v23  ;;  %1113 = vmatprep.mubr.f32.mxu1 %v266_v21  ;;  %v269_v25 = vmax.f32 %v243_v22, 0.0 }
  0xf0   :  { %v1065_v26 = vpop.f32.mrf.mxu0  ;;  %1114 = vmatmul.mubr.f32.gmra.mxu1 %v267_v19  ;;  %v926_v19 = vld [vmem:[%s1614_s6] ss:$0 sm:$0xff] }
  0xf1   :  { %v268_v27 = vmax.f32 %v238_v24, 0.0  ;;  %v253_v28 = vadd.f32 %v1065_v26, %v1445_v48 }
  0xf2   :  { %v247_v29 = vpop.f32.mrf.mxu0 }
  0xf3   :  { %v248_v30 = vadd.f32 %v1445_v48, %v247_v29  ;;  %1116 = vmatprep.mubr.f32.mxu1 %v268_v27  ;;  %v271_v31 = vmax.f32 %v253_v28, 0.0 }
  0xf4   :  { %1117 = vmatmul.mubr.f32.gmra.mxu1 %v269_v25 }
  0xf5   :  { %v270_v32 = vmax.f32 %v248_v30, 0.0 }
  0xf7   :  { %1119 = vmatprep.mubr.f32.mxu1 %v270_v32 }
  0xf8   :  { %1120 = vmatmul.mubr.f32.gmra.mxu1 %v271_v31 }
 0x19c   :  { %v1100_v35 = vpop.f32.mrf.mxu1 }
 0x19d   :  { %v367_v36 = vadd.f32 %v1100_v35, %v925_v34 }
 0x19e   :  { %v361_v37 = vpop.f32.mrf.mxu1 }
 0x19f   :  { %v362_v38 = vadd.f32 %v925_v34, %v361_v37  ;;  %v441_v41 = vmax.f32 %v367_v36, 0.0 }
 0x1a0   :  { %v1103_v39 = vpop.f32.mrf.mxu1 }
 0x1a1   :  { %v440_v40 = vmax.f32 %v362_v38, 0.0  ;;  %v377_v42 = vadd.f32 %v1103_v39, %v925_v34 }
 0x1a2   :  { %v371_v43 = vpop.f32.mrf.mxu1 }
 0x1a3   :  { %v372_v44 = vadd.f32 %v925_v34, %v371_v43  ;;  %1138 = vmatprep.mubr.msk.f32.mxu0 %vm471_vm2, %v440_v40  ;;  %v443_v47 = vmax.f32 %v377_v42, 0.0 }
 0x1a4   :  { %v1106_v45 = vpop.f32.mrf.mxu1  ;;  %1139 = vmatmul.mubr.msk.f32.vlgmr.msra.gmra.mxu0 %vm471_vm2, %v441_v41 }
 0x1a5   :  { %v442_v46 = vmax.f32 %v372_v44, 0.0  ;;  %v387_v48 = vadd.f32 %v1106_v45, %v925_v34 }
 0x1a6   :  { %v381_v49 = vpop.f32.mrf.mxu1 }
 0x1a7   :  { %v382_v50 = vadd.f32 %v925_v34, %v381_v49  ;;  %1141 = vmatprep.mubr.msk.f32.mxu0 %vm471_vm2, %v442_v46  ;;  %v445_v53 = vmax.f32 %v387_v48, 0.0 }
 0x1a8   :  { %v1109_v51 = vpop.f32.mrf.mxu1  ;;  %1142 = vmatmul.mubr.msk.f32.gmra.mxu0 %vm471_vm2, %v443_v47 }
 0x1a9   :  { %v444_v52 = vmax.f32 %v382_v50, 0.0  ;;  %v397_v54 = vadd.f32 %v1109_v51, %v925_v34 }
 0x1aa   :  { %v391_v55 = vpop.f32.mrf.mxu1 }
 0x1ab   :  { %v392_v56 = vadd.f32 %v925_v34, %v391_v55  ;;  %1144 = vmatprep.mubr.msk.f32.mxu0 %vm471_vm2, %v444_v52  ;;  %v447_v59 = vmax.f32 %v397_v54, 0.0 }
 0x1ac   :  { %v1112_v57 = vpop.f32.mrf.mxu1  ;;  %1145 = vmatmul.mubr.msk.f32.gmra.mxu0 %vm471_vm2, %v445_v53 }
 0x1ad   :  { %v446_v58 = vmax.f32 %v392_v56, 0.0  ;;  %v407_v60 = vadd.f32 %v1112_v57, %v925_v34 }
 0x1ae   :  { %v401_v61 = vpop.f32.mrf.mxu1 }
 0x1af   :  { %v402_v62 = vadd.f32 %v925_v34, %v401_v61  ;;  %1147 = vmatprep.mubr.msk.f32.mxu0 %vm471_vm2, %v446_v58  ;;  %v449_v1 = vmax.f32 %v407_v60, 0.0 }
 0x1b0   :  { %v1115_v63 = vpop.f32.mrf.mxu1  ;;  %1148 = vmatmul.mubr.msk.f32.gmra.mxu0 %vm471_vm2, %v447_v59 }
 0x1b1   :  { %v448_v0 = vmax.f32 %v402_v62, 0.0  ;;  %v417_v2 = vadd.f32 %v1115_v63, %v925_v34 }
 0x1b2   :  { %v411_v3 = vpop.f32.mrf.mxu1 }
 0x1b3   :  { %v412_v4 = vadd.f32 %v925_v34, %v411_v3  ;;  %1150 = vmatprep.mubr.msk.f32.mxu0 %vm471_vm2, %v448_v0  ;;  %v451_v7 = vmax.f32 %v417_v2, 0.0 }
 0x1b4   :  { %v1118_v5 = vpop.f32.mrf.mxu1  ;;  %1151 = vmatmul.mubr.msk.f32.gmra.mxu0 %vm471_vm2, %v449_v1 }
 0x1b5   :  { %v450_v6 = vmax.f32 %v412_v4, 0.0  ;;  %v427_v8 = vadd.f32 %v1118_v5, %v925_v34 }
 0x1b6   :  { %v421_v9 = vpop.f32.mrf.mxu1 }
 0x1b7   :  { %v422_v10 = vadd.f32 %v925_v34, %v421_v9  ;;  %1153 = vmatprep.mubr.msk.f32.mxu0 %vm471_vm2, %v450_v6  ;;  %v453_v13 = vmax.f32 %v427_v8, 0.0 }
 0x1b8   :  { %v1121_v11 = vpop.f32.mrf.mxu1  ;;  %1154 = vmatmul.mubr.msk.f32.gmra.mxu0 %vm471_vm2, %v451_v7 }
 0x1b9   :  { %v452_v12 = vmax.f32 %v422_v10, 0.0  ;;  %v437_v14 = vadd.f32 %v1121_v11, %v925_v34 }
 0x1ba   :  { %v431_v15 = vpop.f32.mrf.mxu1 }
 0x1bb   :  { %v432_v16 = vadd.f32 %v925_v34, %v431_v15  ;;  %1156 = vmatprep.mubr.msk.f32.mxu1 %vm471_vm2, %v452_v12  ;;  %v455_v18 = vmax.f32 %v437_v14, 0.0 }
 0x1bc   :  { %1157 = vmatmul.mubr.msk.f32.vlgmr.msra.gmra.mxu1 %vm471_vm2, %v453_v13 }
 0x1bd   :  { %v454_v17 = vmax.f32 %v432_v16, 0.0 }
 0x1bf   :  { %1159 = vmatprep.mubr.msk.f32.mxu1 %vm471_vm2, %v454_v17 }
 0x1c0   :  { %1160 = vmatmul.mubr.msk.f32.gmra.mxu1 %vm471_vm2, %v455_v18 }
 0x264   :  { %v1140_v20 = vpop.f32.mrf.mxu0 }
 0x265   :  { %v1488_v21 = vadd.f32 %v1140_v20, %v926_v19 }
 0x266   :  { %v586_v22 = vpop.f32.mrf.mxu0 }
 0x267   :  { %v1490_v23 = vadd.f32 %v926_v19, %v586_v22  ;;  %v669_v24 = vsel %vm665_vm3, %v1488_v21, -inf }
 0x268   :  { %670 = vmax.xlane.f32.xlu0 %v669_v24  ;;  %v1143_v25 = vpop.f32.mrf.mxu0 }
 0x269   :  { %v1494_v26 = vadd.f32 %v1143_v25, %v926_v19  ;;  %v666_v30 = vsel %vm665_vm3, %v1490_v23, -inf }
 0x26a   :  { %v596_v27 = vpop.f32.mrf.mxu0 }
 0x26b   :  { %v1496_v28 = vadd.f32 %v926_v19, %v596_v27  ;;  %v675_v29 = vsel %vm665_vm3, %v1494_v26, -inf }
 0x26c   :  { %676 = vmax.xlane.f32.xlu1 %v675_v29  ;;  %v1146_v31 = vpop.f32.mrf.mxu0  ;;  %667 = vmax.xlane.f32.xlu0 %v666_v30 }
 0x26d   :  { %v1502_v33 = vadd.f32 %v1146_v31, %v926_v19  ;;  %v672_v35 = vsel %vm665_vm3, %v1496_v28, -inf }
 0x26e   :  { %v606_v32 = vpop.f32.mrf.mxu0 }
 0x26f   :  { %v1504_v34 = vadd.f32 %v926_v19, %v606_v32  ;;  %v681_v41 = vsel %vm665_vm3, %v1502_v33, -inf }
 0x270   :  { %v1149_v36 = vpop.f32.mrf.mxu0  ;;  %673 = vmax.xlane.f32.xlu1 %v672_v35 }
 0x271   :  { %v678_v37 = vsel %vm665_vm3, %v1504_v34, -inf  ;;  %v1510_v39 = vadd.f32 %v1149_v36, %v926_v19 }
 0x272   :  { %v616_v38 = vpop.f32.mrf.mxu0  ;;  %679 = vmax.xlane.f32.xlu0 %v678_v37 }
 0x273   :  { %v1512_v40 = vadd.f32 %v926_v19, %v616_v38  ;;  %v687_v47 = vsel %vm665_vm3, %v1510_v39, -inf }
 0x274   :  { %v1152_v42 = vpop.f32.mrf.mxu0  ;;  %682 = vmax.xlane.f32.xlu1 %v681_v41 }
 0x275   :  { %v684_v43 = vsel %vm665_vm3, %v1512_v40, -inf  ;;  %v1518_v45 = vadd.f32 %v1152_v42, %v926_v19 }
 0x276   :  { %v626_v44 = vpop.f32.mrf.mxu0  ;;  %685 = vmax.xlane.f32.xlu0 %v684_v43 }
 0x277   :  { %v1520_v46 = vadd.f32 %v926_v19, %v626_v44  ;;  %v693_v53 = vsel %vm665_vm3, %v1518_v45, -inf }
 0x278   :  { %v1155_v48 = vpop.f32.mrf.mxu0  ;;  %688 = vmax.xlane.f32.xlu1 %v687_v47 }
 0x279   :  { %v690_v49 = vsel %vm665_vm3, %v1520_v46, -inf  ;;  %v1526_v51 = vadd.f32 %v1155_v48, %v926_v19 }
 0x27a   :  { %v636_v50 = vpop.f32.mrf.mxu0  ;;  %691 = vmax.xlane.f32.xlu0 %v690_v49 }
 0x27b   :  { %v1528_v52 = vadd.f32 %v926_v19, %v636_v50  ;;  %v699_v59 = vsel %vm665_vm3, %v1526_v51, -inf }
 0x27c   :  { %v1158_v54 = vpop.f32.mrf.mxu1  ;;  %694 = vmax.xlane.f32.xlu1 %v693_v53 }
 0x27d   :  { %v696_v55 = vsel %vm665_vm3, %v1528_v52, -inf  ;;  %v1534_v57 = vadd.f32 %v1158_v54, %v926_v19 }
 0x27e   :  { %v646_v56 = vpop.f32.mrf.mxu1  ;;  %697 = vmax.xlane.f32.xlu0 %v696_v55 }
 0x27f   :  { %v1536_v58 = vadd.f32 %v926_v19, %v646_v56  ;;  %v705_v1 = vsel %vm665_vm3, %v1534_v57, -inf }
 0x280   :  { %v1161_v60 = vpop.f32.mrf.mxu1  ;;  %700 = vmax.xlane.f32.xlu1 %v699_v59 }
 0x281   :  { %v702_v61 = vsel %vm665_vm3, %v1536_v58, -inf  ;;  %v1542_v63 = vadd.f32 %v1161_v60, %v926_v19 }
 0x282   :  { %v656_v62 = vpop.f32.mrf.mxu1  ;;  %703 = vmax.xlane.f32.xlu0 %v702_v61 }
 0x283   :  { %v1544_v0 = vadd.f32 %v926_v19, %v656_v62  ;;  %v711_v3 = vsel %vm665_vm3, %v1542_v63, -inf }
 0x284   :  { %706 = vmax.xlane.f32.xlu1 %v705_v1 }
 0x285   :  { %v708_v2 = vsel %vm665_vm3, %v1544_v0, -inf }
 0x286   :  { %709 = vmax.xlane.f32.xlu0 %v708_v2 }
 0x288   :  { %712 = vmax.xlane.f32.xlu1 %v711_v3 }
 0x2f1   :  { %v671_v4 = vpop.xlane.xlu0 %670 }
 0x2f2   :  { %v715_v5 = vsub.f32 %v1488_v21, %v671_v4 }
 0x2f4   :  { %v732_v6 = vmul.f32 1.442695, %v715_v5 }
 0x2f5   :  { %v677_v7 = vpop.xlane.xlu1 %676  ;;  %v668_v8 = vpop.xlane.xlu0 %667 }
 0x2f6   :  { %1178 = vpow2.f32 %v732_v6  ;;  %v717_v9 = vsub.f32 %v1494_v26, %v677_v7  ;;  %v714_v10 = vsub.f32 %v1490_v23, %v668_v8 }
 0x2f8   :  { %v736_v11 = vmul.f32 1.442695, %v717_v9  ;;  %v730_v12 = vmul.f32 1.442695, %v714_v10 }
 0x2f9   :  { %v674_v13 = vpop.xlane.xlu1 %673 }
 0x2fa   :  { %1180 = vpow2.f32 %v736_v11  ;;  %v716_v14 = vsub.f32 %v1496_v28, %v674_v13 }
 0x2fb   :  { %1182 = vpow2.f32 %v730_v12  ;;  %v680_v15 = vpop.xlane.xlu0 %679 }
 0x2fc   :  { %v734_v16 = vmul.f32 1.442695, %v716_v14  ;;  %v718_v17 = vsub.f32 %v1504_v34, %v680_v15 }
 0x2fd   :  { %v683_v18 = vpop.xlane.xlu1 %682 }
 0x2fe   :  { %1184 = vpow2.f32 %v734_v16  ;;  %v738_v19 = vmul.f32 1.442695, %v718_v17  ;;  %v719_v20 = vsub.f32 %v1502_v33, %v683_v18 }
 0x2ff   :  { %v686_v21 = vpop.xlane.xlu0 %685 }
 0x300   :  { %v740_v22 = vmul.f32 1.442695, %v719_v20  ;;  %v720_v23 = vsub.f32 %v1512_v40, %v686_v21  ;;  %1186 = vpow2.f32 %v738_v19 }
 0x301   :  { %v689_v24 = vpop.xlane.xlu1 %688 }
 0x302   :  { %1188 = vpow2.f32 %v740_v22  ;;  %v742_v25 = vmul.f32 1.442695, %v720_v23  ;;  %v721_v26 = vsub.f32 %v1510_v39, %v689_v24 }
 0x303   :  { %v1560_v27 = vpop.eup %1178  ;;  %v692_v28 = vpop.xlane.xlu0 %691 }
 0x304   :  { %v744_v29 = vmul.f32 1.442695, %v721_v26  ;;  %v722_v30 = vsub.f32 %v1520_v46, %v692_v28  ;;  %v765_v31 = vsel %vm665_vm3, %v1560_v27, 0.0  ;;  %1190 = vpow2.f32 %v742_v25 }
 0x305   :  { %766 = vadd.xlane.f32.xlu1 %v765_v31  ;;  %v695_v32 = vpop.xlane.xlu1 %694 }
 0x306   :  { %1192 = vpow2.f32 %v744_v29  ;;  %v746_v33 = vmul.f32 1.442695, %v722_v30  ;;  %v723_v34 = vsub.f32 %v1518_v45, %v695_v32 }
 0x307   :  { %v1181_v35 = vpop.eup %1180  ;;  %v698_v36 = vpop.xlane.xlu0 %697 }
 0x308   :  { %v1566_v37 = vpop.eup %1182  ;;  %v748_v38 = vmul.f32 1.442695, %v723_v34  ;;  %v724_v39 = vsub.f32 %v1528_v52, %v698_v36  ;;  %v771_v40 = vsel %vm665_vm3, %v1181_v35, 0.0  ;;  %1194 = vpow2.f32 %v746_v33 }
 0x309   :  { %772 = vadd.xlane.f32.xlu1 %v771_v40  ;;  %v701_v41 = vpop.xlane.xlu1 %700  ;;  %v762_v42 = vsel %vm665_vm3, %v1566_v37, 0.0 }
 0x30a   :  { %1196 = vpow2.f32 %v748_v38  ;;  %v750_v43 = vmul.f32 1.442695, %v724_v39  ;;  %v725_v44 = vsub.f32 %v1526_v51, %v701_v41  ;;  %763 = vadd.xlane.f32.xlu0 %v762_v42 }
 0x30b   :  { %v1573_v45 = vpop.eup %1184  ;;  %v704_v46 = vpop.xlane.xlu0 %703 }
 0x30c   :  { %v752_v47 = vmul.f32 1.442695, %v725_v44  ;;  %v726_v48 = vsub.f32 %v1536_v58, %v704_v46  ;;  %v768_v49 = vsel %vm665_vm3, %v1573_v45, 0.0  ;;  %1198 = vpow2.f32 %v750_v43 }
 0x30d   :  { %v707_v50 = vpop.xlane.xlu1 %706  ;;  %v1187_v52 = vpop.eup %1186 }
 0x30e   :  { %1200 = vpow2.f32 %v752_v47  ;;  %v754_v53 = vmul.f32 1.442695, %v726_v48  ;;  %v727_v54 = vsub.f32 %v1534_v57, %v707_v50  ;;  %769 = vadd.xlane.f32.xlu0 %v768_v49  ;;  %v774_v61 = vsel %vm665_vm3, %v1187_v52, 0.0 }
 0x30f   :  { %v1189_v55 = vpop.eup %1188  ;;  %v710_v51 = vpop.xlane.xlu0 %709 }
 0x310   :  { %v756_v56 = vmul.f32 1.442695, %v727_v54  ;;  %v728_v59 = vsub.f32 %v1544_v0, %v710_v51  ;;  %v777_v60 = vsel %vm665_vm3, %v1189_v55, 0.0  ;;  %1202 = vpow2.f32 %v754_v53 }
 0x311   :  { %778 = vadd.xlane.f32.xlu1 %v777_v60  ;;  %v713_v58 = vpop.xlane.xlu1 %712  ;;  %v1191_v62 = vpop.eup %1190 }
 0x312   :  { %1204 = vpow2.f32 %v756_v56  ;;  %v758_v1 = vmul.f32 1.442695, %v728_v59  ;;  %v729_v2 = vsub.f32 %v1542_v63, %v713_v58  ;;  %775 = vadd.xlane.f32.xlu0 %v774_v61  ;;  %v780_v0 = vsel %vm665_vm3, %v1191_v62, 0.0 }
 0x313   :  { %v1193_v57 = vpop.eup %1192 }
 0x314   :  { %v760_v3 = vmul.f32 1.442695, %v729_v2  ;;  %v783_v4 = vsel %vm665_vm3, %v1193_v57, 0.0  ;;  %1206 = vpow2.f32 %v758_v1 }
 0x315   :  { %784 = vadd.xlane.f32.xlu1 %v783_v4  ;;  %v1195_v5 = vpop.eup %1194 }
 0x316   :  { %1208 = vpow2.f32 %v760_v3  ;;  %781 = vadd.xlane.f32.xlu0 %v780_v0  ;;  %v786_v8 = vsel %vm665_vm3, %v1195_v5, 0.0 }
 0x317   :  { %v1197_v6 = vpop.eup %1196 }
 0x318   :  { %v789_v7 = vsel %vm665_vm3, %v1197_v6, 0.0 }
 0x319   :  { %790 = vadd.xlane.f32.xlu1 %v789_v7  ;;  %v1199_v9 = vpop.eup %1198 }
 0x31a   :  { %787 = vadd.xlane.f32.xlu0 %v786_v8  ;;  %v792_v11 = vsel %vm665_vm3, %v1199_v9, 0.0 }
 0x31b   :  { %v1201_v63 = vpop.eup %1200 }
 0x31c   :  { %v795_v10 = vsel %vm665_vm3, %v1201_v63, 0.0 }
 0x31d   :  { %796 = vadd.xlane.f32.xlu1 %v795_v10  ;;  %v1203_v12 = vpop.eup %1202 }
 0x31e   :  { %793 = vadd.xlane.f32.xlu0 %v792_v11  ;;  %v798_v15 = vsel %vm665_vm3, %v1203_v12, 0.0 }
 0x31f   :  { %v1205_v13 = vpop.eup %1204 }
 0x320   :  { %v801_v14 = vsel %vm665_vm3, %v1205_v13, 0.0 }
 0x321   :  { %802 = vadd.xlane.f32.xlu1 %v801_v14  ;;  %v1207_v16 = vpop.eup %1206 }
 0x322   :  { %799 = vadd.xlane.f32.xlu0 %v798_v15  ;;  %v804_v19 = vsel %vm665_vm3, %v1207_v16, 0.0 }
 0x323   :  { %v1209_v17 = vpop.eup %1208 }
 0x324   :  { %v807_v18 = vsel %vm665_vm3, %v1209_v17, 0.0 }
 0x325   :  { %808 = vadd.xlane.f32.xlu1 %v807_v18 }
 0x326   :  { %805 = vadd.xlane.f32.xlu0 %v804_v19 }
 0x38e   :  { %v767_v20 = vpop.xlane.xlu1 %766 }
 0x38f   :  { %1210 = vrcp.f32 %v767_v20 }
 0x392   :  { %v773_v21 = vpop.xlane.xlu1 %772 }
 0x393   :  { %1212 = vrcp.f32 %v773_v21  ;;  %v764_v22 = vpop.xlane.xlu0 %763 }
 0x394   :  { %1214 = vrcp.f32 %v764_v22 }
 0x397   :  { %v770_v23 = vpop.xlane.xlu0 %769 }
 0x398   :  { %1216 = vrcp.f32 %v770_v23 }
 0x39a   :  { %v779_v24 = vpop.xlane.xlu1 %778 }
 0x39b   :  { %1218 = vrcp.f32 %v779_v24  ;;  %v776_v25 = vpop.xlane.xlu0 %775 }
 0x39c   :  { %v1211_v26 = vpop.eup %1210  ;;  %1220 = vrcp.f32 %v776_v25 }
 0x39d   :  { %v827_v28 = vmul.f32 %v1211_v26, %v1560_v27 }
 0x39e   :  { %v785_v29 = vpop.xlane.xlu1 %784 }
 0x39f   :  { %843 = vst.msk [vmem:[#allocation2 + $0x8] sm:$0xff] %vm665_vm3, %v827_v28  ;;  %1222 = vrcp.f32 %v785_v29  ;;  %v782_v30 = vpop.xlane.xlu0 %781 }
 0x3a0   :  { %v1213_v31 = vpop.eup %1212  ;;  %1224 = vrcp.f32 %v782_v30 }
 0x3a1   :  { %v1215_v32 = vpop.eup %1214 }
 0x3a2   :  { %v826_v33 = vmul.f32 %v1215_v32, %v1566_v37  ;;  %v791_v34 = vpop.xlane.xlu1 %790 }
 0x3a3   :  { %1226 = vrcp.f32 %v791_v34  ;;  %v788_v35 = vpop.xlane.xlu0 %787 }
 0x3a4   :  { %842 = vst.msk [vmem:[#allocation2] sm:$0xff] %vm665_vm3, %v826_v33  ;;  %1228 = vrcp.f32 %v788_v35 }
 0x3a5   :  { %v1217_v36 = vpop.eup %1216 }
 0x3a6   :  { %v894_v38 = vld [vmem:[#allocation2 + $0x8] sm:$0xff]  ;;  %v828_v27 = vmul.f32 %v1217_v36, %v1573_v45  ;;  %v797_v39 = vpop.xlane.xlu1 %796 }
 0x3a7   :  { %895 = vst [vmem:[%s1615_s7 + $0x8] sm:$0xff] %v894_v38  ;;  %1230 = vrcp.f32 %v797_v39  ;;  %v794_v40 = vpop.xlane.xlu0 %793 }
 0x3a8   :  { %v1219_v41 = vpop.eup %1218  ;;  %844 = vst.msk [vmem:[#allocation2 + $0x10] sm:$0xff] %vm665_vm3, %v828_v27  ;;  %1232 = vrcp.f32 %v794_v40 }
 0x3a9   :  { %v1221_v37 = vpop.eup %1220 }
 0x3aa   :  { %v803_v42 = vpop.xlane.xlu1 %802 }
 0x3ab   :  { %v892_v43 = vld [vmem:[#allocation2] sm:$0xff]  ;;  %1234 = vrcp.f32 %v803_v42  ;;  %v800_v44 = vpop.xlane.xlu0 %799 }
 0x3ac   :  { %v1223_v46 = vpop.eup %1222  ;;  %893 = vst [vmem:[%s1615_s7] sm:$0xff] %v892_v43  ;;  %1236 = vrcp.f32 %v800_v44 }
 0x3ad   :  { %v1225_v45 = vpop.eup %1224 }
 0x3ae   :  { %v809_v47 = vpop.xlane.xlu1 %808 }
 0x3af   :  { %v896_v48 = vld [vmem:[#allocation2 + $0x10] sm:$0xff]  ;;  %1238 = vrcp.f32 %v809_v47  ;;  %v806_v49 = vpop.xlane.xlu0 %805 }
 0x3b0   :  { %v1227_v50 = vpop.eup %1226  ;;  %897 = vst [vmem:[%s1615_s7 + $0x10] sm:$0xff] %v896_v48  ;;  %1240 = vrcp.f32 %v806_v49 }
 0x3b1   :  { %v1229_v52 = vpop.eup %1228 }
 0x3b4   :  { %v1231_v53 = vpop.eup %1230 }
 0x3b5   :  { %v1233_v54 = vpop.eup %1232 }
 0x3b8   :  { %v1235_v55 = vpop.eup %1234 }
 0x3b9   :  { %v1237_v51 = vpop.eup %1236 }
 0x3bc   :  { %v1239_v56 = vpop.eup %1238 }
 0x3bd   :  { %v1241_v59 = vpop.eup %1240 }

</bundles_post_ra>
